<compile_context>
chip_gen: v6e
topology: v6e:2x2x1
jax: 0.10.0
libtpu: 0.0.40
codegen_flags: <defaults>
</compile_context>

<pallas_src>
import jax
import jax.numpy as jnp
from jax import lax
from jax.experimental import pallas as pl
from jax.experimental.pallas import tpu as pltpu


_NC = 256  # N-chunk width for the conv+pool stage (fills the 256-wide MXU)


def fee_kernel(x_ref, w1_ref, bias_ref, w2_ref, b2_ref, w3_ref, b3_ref,
               out_ref, pooled_ref):
    # x_ref:      (HW*tile_b, Cin) bf16, rows ordered [h, b_in_tile]
    # w1_ref:     (Cin, 512)       bf16, BN scale pre-folded
    # bias_ref:   (1, 512)         f32, folded BN bias
    # w2_ref:     (512, 512) bf16 (pool 1/9 pre-folded), b2_ref: (1, 512) f32
    # w3_ref:     (512, 128) bf16 (zero-padded past col 16), b3_ref: (1, 128) f32
    # out_ref:    (tile_b, 128)    bf16
    # pooled_ref: (tile_b, 512)    bf16 VMEM scratch (unscaled pooled sum)
    m = x_ref.shape[0]
    tile_b = out_ref.shape[0]
    hw = m // tile_b
    n_mid = w1_ref.shape[1]
    nc = min(_NC, n_mid)
    assert n_mid % nc == 0

    xf = x_ref[...]  # (hw*tile_b, Cin)

    # conv1x1 + BN(eval) + relu6 per spatial position, summed over the 3x3
    # window (AvgPool2d(3) collapses the whole map; the 1/9 lives in w2).
    for c0 in range(0, n_mid, nc):
        w1c = w1_ref[:, c0:c0 + nc]                       # (Cin, nc) bf16
        y = jnp.dot(xf, w1c, preferred_element_type=jnp.float32)
        y = jnp.clip(y + bias_ref[:, c0:c0 + nc], 0.0, 6.0)
        pc = y[0:tile_b, :]
        for h in range(1, hw):                            # static, hw == 9
            pc = pc + y[h * tile_b:(h + 1) * tile_b, :]
        pooled_ref[:, c0:c0 + nc] = pc.astype(pooled_ref.dtype)

    # FC512 + relu6 (Dropout(p=0.5) is identity in eval mode); w2 carries 1/9.
    h1 = jnp.dot(pooled_ref[...], w2_ref[...],
                 preferred_element_type=jnp.float32)
    h1 = jnp.clip(h1 + b2_ref[...], 0.0, 6.0)

    # FC16 on a lane-dense (512, 128) tile; columns 16..127 are exactly zero.
    o = jnp.dot(h1.astype(w3_ref.dtype), w3_ref[...],
                preferred_element_type=jnp.float32) + b3_ref[...]

    # F.normalize: L2 over the feature dim, eps = 1e-12.
    ss = jnp.sum(o * o, axis=-1, keepdims=True)
    out_ref[...] = (o * lax.rsqrt(jnp.maximum(ss, 1e-24))).astype(out_ref.dtype)


def _round_up(x, m):
    return ((x + m - 1) // m) * m


def _choose_tile(B, tile_b=None):
    """Pick a batch tile (multiple of 16); prefer >=2 grid steps for v7x."""
    Bp = _round_up(B, 16)
    if tile_b is None:
        tile_b = min(256, Bp)
        if Bp // tile_b < 2 and Bp >= 32:
            # Split so both v7x TensorCores get work ("parallel" batch axis).
            tile_b = _round_up((Bp + 1) // 2, 16)
    else:
        tile_b = _round_up(tile_b, 16)
    Bp = _round_up(Bp, tile_b)
    return tile_b, Bp


def fee_net_forward(x_nchw, params, *, tile_b=None):
    """x_nchw: (B, Cin, 3, 3) backbone feature map (float32)."""
    # TODO(synk): backbone_function(pretrained=True) is an external pluggable
    # network and is not reproduced; x_nchw stands in for its feature map.
    # Ideally the backbone emits spatial-major / channels-last features so the
    # relayout below fuses away.
    B, Cin, H, W = x_nchw.shape
    assert H == 3 and W == 3, "AvgPool2d(3) + Linear(512) requires a 3x3 map"
    HW = H * W

    tile_b, Bp = _choose_tile(B, tile_b)
    n_tiles = Bp // tile_b

    # Fold eval-mode BatchNorm running stats into w1 (conv has no bias).
    eps = 1e-5
    bn_scale = params["bn_gamma"] / jnp.sqrt(params["bn_var"] + eps)
    bn_bias = (params["bn_beta"] - params["bn_mean"] * bn_scale).reshape(1, 512)
    w1_folded = (params["w1"] * bn_scale[None, :]).astype(jnp.bfloat16)

    # Spatial-major, batch-tile-major layout: rows ordered [tile, h, b_in_tile]
    # so each grid step gets a contiguous (HW*tile_b, Cin) slab and the kernel
    # needs no reshape; pad batch with zero rows up to the tile size.
    x_hw = jnp.transpose(x_nchw, (2, 3, 0, 1)).reshape(HW, B, Cin)
    if Bp != B:
        x_hw = jnp.pad(x_hw, ((0, 0), (0, Bp - B), (0, 0)))
    x_flat = (x_hw.reshape(HW, n_tiles, tile_b, Cin)
                   .transpose(1, 0, 2, 3)
                   .reshape(n_tiles * HW * tile_b, Cin)
                   .astype(jnp.bfloat16))

    # Fold the 1/9 average-pool scale into w2 (kernel stores the pooled SUM).
    w2_scaled = (params["w2"] * (1.0 / HW)).astype(jnp.bfloat16)
    b2 = params["b2"].reshape(1, 512).astype(jnp.float32)

    # Lane-dense head: pad the 16-wide output to 128 lanes with zeros.
    w3p = jnp.zeros((512, 128), jnp.float32).at[:, :16].set(params["w3"])
    w3p = w3p.astype(jnp.bfloat16)
    b3p = jnp.zeros((1, 128), jnp.float32).at[:, :16].set(
        params["b3"].astype(jnp.float32))

    grid = (n_tiles,)
    out_padded = pl.pallas_call(
        fee_kernel,
        out_shape=jax.ShapeDtypeStruct((Bp, 128), jnp.bfloat16),
        grid_spec=pltpu.PrefetchScalarGridSpec(
            num_scalar_prefetch=0,
            grid=grid,
            in_specs=[
                pl.BlockSpec((HW * tile_b, Cin), lambda j: (j, 0)),  # x tile
                pl.BlockSpec((Cin, 512), lambda j: (0, 0)),          # w1 (resident)
                pl.BlockSpec((1, 512), lambda j: (0, 0)),            # bn bias
                pl.BlockSpec((512, 512), lambda j: (0, 0)),          # w2 (1/9 folded)
                pl.BlockSpec((1, 512), lambda j: (0, 0)),            # b2
                pl.BlockSpec((512, 128), lambda j: (0, 0)),          # w3 (padded)
                pl.BlockSpec((1, 128), lambda j: (0, 0)),            # b3 (padded)
            ],
            out_specs=pl.BlockSpec((tile_b, 128), lambda j: (j, 0)),
            scratch_shapes=[pltpu.VMEM((tile_b, 512), jnp.bfloat16)],
        ),
        compiler_params=pltpu.CompilerParams(
            dimension_semantics=("parallel",),
        ),
    )(x_flat, w1_folded, bn_bias, w2_scaled, b2, w3p, b3p)

    return out_padded[:B, :16].astype(jnp.float32)


def _reference(x_nchw, params):
    """Pure-JAX f32 reference mirroring the PyTorch forward (eval mode)."""
    eps = 1e-5
    x = jnp.einsum("bchw,co->bohw", x_nchw, params["w1"])                # conv1x1
    scale = params["bn_gamma"] / jnp.sqrt(params["bn_var"] + eps)
    bias = params["bn_beta"] - params["bn_mean"] * scale
    x = x * scale[None, :, None, None] + bias[None, :, None, None]      # BN (eval)
    x = jnp.clip(x, 0.0, 6.0)                                           # relu6
    x = jnp.mean(x, axis=(2, 3))                                        # AvgPool2d(3)
    x = jnp.clip(x @ params["w2"] + params["b2"], 0.0, 6.0)             # FC512+relu6
    x = x @ params["w3"] + params["b3"]                                 # FC16
    n = jnp.sqrt(jnp.sum(x * x, axis=1, keepdims=True))
    return x / jnp.maximum(n, 1e-12)                                    # F.normalize


def make_params(key, inchannel):
    ks = jax.random.split(key, 8)
    return {
        "w1": 0.05 * jax.random.normal(ks[0], (inchannel, 512), jnp.float32),
        "bn_gamma": 1.0 + 0.1 * jax.random.normal(ks[1], (512,), jnp.float32),
        "bn_beta": 0.1 * jax.random.normal(ks[2], (512,), jnp.float32),
        "bn_mean": 0.05 * jax.random.normal(ks[3], (512,), jnp.float32),
        "bn_var": 0.5 + jnp.abs(jax.random.normal(ks[4], (512,), jnp.float32)),
        "w2": 0.03 * jax.random.normal(ks[5], (512, 512), jnp.float32),
        "b2": 0.01 * jnp.arange(512, dtype=jnp.float32) / 512.0,
        "w3": 0.05 * jax.random.normal(ks[6], (512, 16), jnp.float32),
        "b3": 0.01 * jax.random.normal(ks[7], (16,), jnp.float32),
    }


if __name__ == "__main__":
    B, INCHANNEL, H, W = 2, 64, 3, 3

    key = jax.random.PRNGKey(0)
    k_x, k_p = jax.random.split(key)
    x = jax.random.normal(k_x, (B, INCHANNEL, H, W), jnp.float32)
    params = make_params(k_p, INCHANNEL)

    out = jax.block_until_ready(fee_net_forward(x, params))
    ref = jax.block_until_ready(_reference(x, params))

    assert out.shape == (B, 16), out.shape
    # Kernel runs its matmuls in bf16 (f32 accumulation) and stores the
    # unit-norm output in bf16, so a few-% absolute tolerance covers rounding
    # while still catching any real math error (which would be O(1)).
    err = float(jnp.max(jnp.abs(out - ref)))
    assert err < 4e-2, f"mismatch vs reference, max abs err = {err}"
    print("KERNEL_OK")
</pallas_src>

<mosaic_0001>
module attributes {stable_mosaic.version = 11 : i64} {
  func.func @fee_kernel(%arg0: i32, %arg1: memref<144x64xbf16, #tpu.memory_space<vmem>>, %arg2: memref<64x512xbf16, #tpu.memory_space<vmem>>, %arg3: memref<1x512xf32, #tpu.memory_space<vmem>>, %arg4: memref<512x512xbf16, #tpu.memory_space<vmem>>, %arg5: memref<1x512xf32, #tpu.memory_space<vmem>>, %arg6: memref<512x128xbf16, #tpu.memory_space<vmem>>, %arg7: memref<1x128xf32, #tpu.memory_space<vmem>>, %arg8: memref<16x128xbf16, #tpu.memory_space<vmem>>, %arg9: memref<16x512xbf16, #tpu.memory_space<vmem>>) attributes {dimension_semantics = [#tpu.dimension_semantics<parallel>], iteration_bounds = array<i64: 1>, scalar_prefetch = 0 : i64, scratch_operands = 1 : i64, tpu.core_type = #tpu.core_type<tc>, window_params = [{transform_indices = @transform_0, window_bounds = array<i64: 144, 64>}, {pipeline_mode = #tpu.pipeline_mode<synchronous>, transform_indices = @transform_1, window_bounds = array<i64: 64, 512>}, {pipeline_mode = #tpu.pipeline_mode<synchronous>, transform_indices = @transform_2, window_bounds = array<i64: 1, 512>}, {pipeline_mode = #tpu.pipeline_mode<synchronous>, transform_indices = @transform_3, window_bounds = array<i64: 512, 512>}, {pipeline_mode = #tpu.pipeline_mode<synchronous>, transform_indices = @transform_4, window_bounds = array<i64: 1, 512>}, {pipeline_mode = #tpu.pipeline_mode<synchronous>, transform_indices = @transform_5, window_bounds = array<i64: 512, 128>}, {pipeline_mode = #tpu.pipeline_mode<synchronous>, transform_indices = @transform_6, window_bounds = array<i64: 1, 128>}, {transform_indices = @transform_7, window_bounds = array<i64: 16, 128>}]} {
    %c0 = arith.constant 0 : index
    %c0_0 = arith.constant 0 : index
    %0 = vector.load %arg1[%c0, %c0_0] : memref<144x64xbf16, #tpu.memory_space<vmem>>, vector<144x64xbf16>
    %c0_1 = arith.constant 0 : index
    %c0_2 = arith.constant 0 : index
    %1 = vector.load %arg2[%c0_1, %c0_2] : memref<64x512xbf16, #tpu.memory_space<vmem>>, vector<64x256xbf16>
    %cst = arith.constant dense<0.000000e+00> : vector<144x256xf32>
    %2 = tpu.matmul %0, %1, %cst {dimension_numbers = #tpu.dot_dimension_numbers<[1], [0], [0], [1], [0, 0, 1, 1], [], []>} : vector<144x64xbf16>, vector<64x256xbf16>, vector<144x256xf32> -> vector<144x256xf32>
    %c0_3 = arith.constant 0 : index
    %c0_4 = arith.constant 0 : index
    %3 = vector.load %arg3[%c0_3, %c0_4] : memref<1x512xf32, #tpu.memory_space<vmem>>, vector<1x256xf32>
    %4 = vector.broadcast %3 : vector<1x256xf32> to vector<144x256xf32>
    %5 = arith.addf %2, %4 : vector<144x256xf32>
    %cst_5 = arith.constant 0.000000e+00 : f32
    %cst_6 = arith.constant 6.000000e+00 : f32
    %6 = vector.broadcast %cst_5 : f32 to vector<144x256xf32>
    %7 = arith.maximumf %6, %5 : vector<144x256xf32>
    %8 = vector.broadcast %cst_6 : f32 to vector<144x256xf32>
    %9 = arith.minimumf %8, %7 : vector<144x256xf32>
    %10 = vector.extract_strided_slice %9 {offsets = [0, 0], sizes = [16, 256], strides = [1, 1]} : vector<144x256xf32> to vector<16x256xf32>
    %11 = vector.extract_strided_slice %9 {offsets = [16, 0], sizes = [16, 256], strides = [1, 1]} : vector<144x256xf32> to vector<16x256xf32>
    %12 = arith.addf %10, %11 : vector<16x256xf32>
    %13 = vector.extract_strided_slice %9 {offsets = [32, 0], sizes = [16, 256], strides = [1, 1]} : vector<144x256xf32> to vector<16x256xf32>
    %14 = arith.addf %12, %13 : vector<16x256xf32>
    %15 = vector.extract_strided_slice %9 {offsets = [48, 0], sizes = [16, 256], strides = [1, 1]} : vector<144x256xf32> to vector<16x256xf32>
    %16 = arith.addf %14, %15 : vector<16x256xf32>
    %17 = vector.extract_strided_slice %9 {offsets = [64, 0], sizes = [16, 256], strides = [1, 1]} : vector<144x256xf32> to vector<16x256xf32>
    %18 = arith.addf %16, %17 : vector<16x256xf32>
    %19 = vector.extract_strided_slice %9 {offsets = [80, 0], sizes = [16, 256], strides = [1, 1]} : vector<144x256xf32> to vector<16x256xf32>
    %20 = arith.addf %18, %19 : vector<16x256xf32>
    %21 = vector.extract_strided_slice %9 {offsets = [96, 0], sizes = [16, 256], strides = [1, 1]} : vector<144x256xf32> to vector<16x256xf32>
    %22 = arith.addf %20, %21 : vector<16x256xf32>
    %23 = vector.extract_strided_slice %9 {offsets = [112, 0], sizes = [16, 256], strides = [1, 1]} : vector<144x256xf32> to vector<16x256xf32>
    %24 = arith.addf %22, %23 : vector<16x256xf32>
    %25 = vector.extract_strided_slice %9 {offsets = [128, 0], sizes = [16, 256], strides = [1, 1]} : vector<144x256xf32> to vector<16x256xf32>
    %26 = arith.addf %24, %25 : vector<16x256xf32>
    %27 = arith.truncf %26 : vector<16x256xf32> to vector<16x256xbf16>
    %c0_7 = arith.constant 0 : index
    %c0_8 = arith.constant 0 : index
    %28 = vector.load %arg9[%c0_7, %c0_8] : memref<16x512xbf16, #tpu.memory_space<vmem>>, vector<16x256xbf16>
    tpu.vector_store %arg9[%c0_7, %c0_8], %27 {strides = array<i32>} : memref<16x512xbf16, #tpu.memory_space<vmem>>, vector<16x256xbf16>,
    %c0_9 = arith.constant 0 : index
    %c256 = arith.constant 256 : index
    %29 = vector.load %arg2[%c0_9, %c256] : memref<64x512xbf16, #tpu.memory_space<vmem>>, vector<64x256xbf16>
    %cst_10 = arith.constant dense<0.000000e+00> : vector<144x256xf32>
    %30 = tpu.matmul %0, %29, %cst_10 {dimension_numbers = #tpu.dot_dimension_numbers<[1], [0], [0], [1], [0, 0, 1, 1], [], []>} : vector<144x64xbf16>, vector<64x256xbf16>, vector<144x256xf32> -> vector<144x256xf32>
    %c0_11 = arith.constant 0 : index
    %c256_12 = arith.constant 256 : index
    %31 = vector.load %arg3[%c0_11, %c256_12] : memref<1x512xf32, #tpu.memory_space<vmem>>, vector<1x256xf32>
    %32 = vector.broadcast %31 : vector<1x256xf32> to vector<144x256xf32>
    %33 = arith.addf %30, %32 : vector<144x256xf32>
    %cst_13 = arith.constant 0.000000e+00 : f32
    %cst_14 = arith.constant 6.000000e+00 : f32
    %34 = vector.broadcast %cst_13 : f32 to vector<144x256xf32>
    %35 = arith.maximumf %34, %33 : vector<144x256xf32>
    %36 = vector.broadcast %cst_14 : f32 to vector<144x256xf32>
    %37 = arith.minimumf %36, %35 : vector<144x256xf32>
    %38 = vector.extract_strided_slice %37 {offsets = [0, 0], sizes = [16, 256], strides = [1, 1]} : vector<144x256xf32> to vector<16x256xf32>
    %39 = vector.extract_strided_slice %37 {offsets = [16, 0], sizes = [16, 256], strides = [1, 1]} : vector<144x256xf32> to vector<16x256xf32>
    %40 = arith.addf %38, %39 : vector<16x256xf32>
    %41 = vector.extract_strided_slice %37 {offsets = [32, 0], sizes = [16, 256], strides = [1, 1]} : vector<144x256xf32> to vector<16x256xf32>
    %42 = arith.addf %40, %41 : vector<16x256xf32>
    %43 = vector.extract_strided_slice %37 {offsets = [48, 0], sizes = [16, 256], strides = [1, 1]} : vector<144x256xf32> to vector<16x256xf32>
    %44 = arith.addf %42, %43 : vector<16x256xf32>
    %45 = vector.extract_strided_slice %37 {offsets = [64, 0], sizes = [16, 256], strides = [1, 1]} : vector<144x256xf32> to vector<16x256xf32>
    %46 = arith.addf %44, %45 : vector<16x256xf32>
    %47 = vector.extract_strided_slice %37 {offsets = [80, 0], sizes = [16, 256], strides = [1, 1]} : vector<144x256xf32> to vector<16x256xf32>
    %48 = arith.addf %46, %47 : vector<16x256xf32>
    %49 = vector.extract_strided_slice %37 {offsets = [96, 0], sizes = [16, 256], strides = [1, 1]} : vector<144x256xf32> to vector<16x256xf32>
    %50 = arith.addf %48, %49 : vector<16x256xf32>
    %51 = vector.extract_strided_slice %37 {offsets = [112, 0], sizes = [16, 256], strides = [1, 1]} : vector<144x256xf32> to vector<16x256xf32>
    %52 = arith.addf %50, %51 : vector<16x256xf32>
    %53 = vector.extract_strided_slice %37 {offsets = [128, 0], sizes = [16, 256], strides = [1, 1]} : vector<144x256xf32> to vector<16x256xf32>
    %54 = arith.addf %52, %53 : vector<16x256xf32>
    %55 = arith.truncf %54 : vector<16x256xf32> to vector<16x256xbf16>
    %c0_15 = arith.constant 0 : index
    %c256_16 = arith.constant 256 : index
    %56 = vector.load %arg9[%c0_15, %c256_16] : memref<16x512xbf16, #tpu.memory_space<vmem>>, vector<16x256xbf16>
    tpu.vector_store %arg9[%c0_15, %c256_16], %55 {strides = array<i32>} : memref<16x512xbf16, #tpu.memory_space<vmem>>, vector<16x256xbf16>,
    %c0_17 = arith.constant 0 : index
    %c0_18 = arith.constant 0 : index
    %57 = vector.load %arg9[%c0_17, %c0_18] : memref<16x512xbf16, #tpu.memory_space<vmem>>, vector<16x512xbf16>
    %c0_19 = arith.constant 0 : index
    %c0_20 = arith.constant 0 : index
    %58 = vector.load %arg4[%c0_19, %c0_20] : memref<512x512xbf16, #tpu.memory_space<vmem>>, vector<512x512xbf16>
    %cst_21 = arith.constant dense<0.000000e+00> : vector<16x512xf32>
    %59 = tpu.matmul %57, %58, %cst_21 {dimension_numbers = #tpu.dot_dimension_numbers<[1], [0], [0], [1], [0, 0, 1, 1], [], []>} : vector<16x512xbf16>, vector<512x512xbf16>, vector<16x512xf32> -> vector<16x512xf32>
    %c0_22 = arith.constant 0 : index
    %c0_23 = arith.constant 0 : index
    %60 = vector.load %arg5[%c0_22, %c0_23] : memref<1x512xf32, #tpu.memory_space<vmem>>, vector<1x512xf32>
    %61 = vector.broadcast %60 : vector<1x512xf32> to vector<16x512xf32>
    %62 = arith.addf %59, %61 : vector<16x512xf32>
    %cst_24 = arith.constant 0.000000e+00 : f32
    %cst_25 = arith.constant 6.000000e+00 : f32
    %63 = vector.broadcast %cst_24 : f32 to vector<16x512xf32>
    %64 = arith.maximumf %63, %62 : vector<16x512xf32>
    %65 = vector.broadcast %cst_25 : f32 to vector<16x512xf32>
    %66 = arith.minimumf %65, %64 : vector<16x512xf32>
    %67 = arith.truncf %66 : vector<16x512xf32> to vector<16x512xbf16>
    %c0_26 = arith.constant 0 : index
    %c0_27 = arith.constant 0 : index
    %68 = vector.load %arg6[%c0_26, %c0_27] : memref<512x128xbf16, #tpu.memory_space<vmem>>, vector<512x128xbf16>
    %cst_28 = arith.constant dense<0.000000e+00> : vector<16x128xf32>
    %69 = tpu.matmul %67, %68, %cst_28 {dimension_numbers = #tpu.dot_dimension_numbers<[1], [0], [0], [1], [0, 0, 1, 1], [], []>} : vector<16x512xbf16>, vector<512x128xbf16>, vector<16x128xf32> -> vector<16x128xf32>
    %c0_29 = arith.constant 0 : index
    %c0_30 = arith.constant 0 : index
    %70 = vector.load %arg7[%c0_29, %c0_30] : memref<1x128xf32, #tpu.memory_space<vmem>>, vector<1x128xf32>
    %71 = vector.broadcast %70 : vector<1x128xf32> to vector<16x128xf32>
    %72 = arith.addf %69, %71 : vector<16x128xf32>
    %73 = arith.mulf %72, %72 : vector<16x128xf32>
    %cst_31 = arith.constant dense<0.000000e+00> : vector<16xf32>
    %74 = vector.multi_reduction <add>, %73, %cst_31 [1] : vector<16x128xf32> to vector<16xf32>
    %75 = vector.shape_cast %74 : vector<16xf32> to vector<16x1xf32>
    %cst_32 = arith.constant 1.000000e-24 : f32
    %76 = vector.broadcast %cst_32 : f32 to vector<16x1xf32>
    %77 = arith.maximumf %75, %76 : vector<16x1xf32>
    %78 = math.rsqrt %77 : vector<16x1xf32>
    %79 = vector.broadcast %78 : vector<16x1xf32> to vector<16x128xf32>
    %80 = arith.mulf %72, %79 : vector<16x128xf32>
    %81 = arith.truncf %80 : vector<16x128xf32> to vector<16x128xbf16>
    %c0_33 = arith.constant 0 : index
    %c0_34 = arith.constant 0 : index
    %82 = vector.load %arg8[%c0_33, %c0_34] : memref<16x128xbf16, #tpu.memory_space<vmem>>, vector<16x128xbf16>
    tpu.vector_store %arg8[%c0_33, %c0_34], %81 {strides = array<i32>} : memref<16x128xbf16, #tpu.memory_space<vmem>>, vector<16x128xbf16>,
    return
  }
  func.func @transform_0(%arg0: i32) -> (i32, i32) {
    %c0_i32 = arith.constant 0 : i32
    %c0_i32_0 = arith.constant 0 : i32
    return %arg0, %c0_i32 : i32, i32
  }
  func.func @transform_1(%arg0: i32) -> (i32, i32) {
    %c0_i32 = arith.constant 0 : i32
    %c0_i32_0 = arith.constant 0 : i32
    %c0_i32_1 = arith.constant 0 : i32
    return %c0_i32, %c0_i32_0 : i32, i32
  }
  func.func @transform_2(%arg0: i32) -> (i32, i32) {
    %c0_i32 = arith.constant 0 : i32
    %c0_i32_0 = arith.constant 0 : i32
    %c0_i32_1 = arith.constant 0 : i32
    return %c0_i32, %c0_i32_0 : i32, i32
  }
  func.func @transform_3(%arg0: i32) -> (i32, i32) {
    %c0_i32 = arith.constant 0 : i32
    %c0_i32_0 = arith.constant 0 : i32
    %c0_i32_1 = arith.constant 0 : i32
    return %c0_i32, %c0_i32_0 : i32, i32
  }
  func.func @transform_4(%arg0: i32) -> (i32, i32) {
    %c0_i32 = arith.constant 0 : i32
    %c0_i32_0 = arith.constant 0 : i32
    %c0_i32_1 = arith.constant 0 : i32
    return %c0_i32, %c0_i32_0 : i32, i32
  }
  func.func @transform_5(%arg0: i32) -> (i32, i32) {
    %c0_i32 = arith.constant 0 : i32
    %c0_i32_0 = arith.constant 0 : i32
    %c0_i32_1 = arith.constant 0 : i32
    return %c0_i32, %c0_i32_0 : i32, i32
  }
  func.func @transform_6(%arg0: i32) -> (i32, i32) {
    %c0_i32 = arith.constant 0 : i32
    %c0_i32_0 = arith.constant 0 : i32
    %c0_i32_1 = arith.constant 0 : i32
    return %c0_i32, %c0_i32_0 : i32, i32
  }
  func.func @transform_7(%arg0: i32) -> (i32, i32) {
    %c0_i32 = arith.constant 0 : i32
    %c0_i32_0 = arith.constant 0 : i32
    return %arg0, %c0_i32 : i32, i32
  }
}

</mosaic_0001>

<bundles_post_ra>
// kernel: tpu_custom_call.1
= control target key start
LH: loop header
LB: loop body
LE: loop exit
PB: predicated region body
PF: predicated region fallthrough
CT: control target
= control target key end

     0   :  { %12 = vsyncpa [#allocation4], 0  ;;  %s3044_s0 = inlined_call_operand.vmem [shape: bf16[144,64], index: 0, kind: input, shape index: {}]   ;;  %s3045_s1 = inlined_call_operand.vmem [shape: bf16[64,512], index: 1, kind: input, shape index: {}]   ;;  %s3046_s2 = inlined_call_operand.vmem [shape: f32[1,512], index: 2, kind: input, shape index: {}]   ;;  %s3047_s3 = inlined_call_operand.hbm [shape: bf16[512,512], index: 3, kind: input, shape index: {}]   ;;  %s3048_s4 = inlined_call_operand.vmem [shape: f32[1,512], index: 4, kind: input, shape index: {}]   ;;  %s3049_s5 = inlined_call_operand.hbm [shape: bf16[512,128], index: 5, kind: input, shape index: {}]   ;;  %s3050_s6 = inlined_call_operand.vmem [shape: f32[1,128], index: 6, kind: input, shape index: {}]   ;;  %s3051_s7 = inlined_call_operand.hbm [shape: bf16[16,128], index: 7, kind: output, shape index: {}]  }
   0x1   :  { %13 = vsyncpa [#allocation7], 0 }
   0x2   :  { %14 = vsyncpa [#allocation5], 0  ;;  %s2748_s24 = smov [#allocation3]  }
   0x3   :  { %s26_s25 = sshll.u32 %s2748_s24, 4  ;;  %s27_s25 = int_to_ptr.vmem [resolvable:$true] %s26_s25 }
   0x4   :  { %s2690_s26 = scalar_lea.vmem %s27_s25, 16384  ;;  %p2695_p1 = scmp.lt.s32.totalorder %s27_s25, %s27_s25 }
   0x5   :  { %p2691_p0 = scmp.ne.s32.totalorder %s27_s25, %s2690_s26  ;;  %p2696_p2 = scmp.lt.s32.totalorder %s2690_s26, %s2690_s26 }
   0x7   :  { %p2697_p3 = por %p2696_p2, %p2695_p1 }
   0x9   :  { %p2698_p4 = pnand %p2697_p3, %p2691_p0 }
   0xb   :  { %2701 = shalt.err (!%p2698_p4)
}
   0xc   :  { %s2749_s27 = smov 256   ;;  %s2750_s28 = smov 16  }
   0xd   :  { %32 = dma.hbm_to_vmem [thread:$0]  %s3047_s3, 16384, %s27_s25, [#allocation4], %s2749_s27, %s2749_s27, %s2750_s28  }
   0xe   :  { %s2751_s8 = smov [#allocation6]  }
   0xf   :  { %s40_s9 = sshll.u32 %s2751_s8, 4  ;;  %s41_s9 = int_to_ptr.vmem [resolvable:$true] %s40_s9 }
  0x10   :  { %s2710_s10 = scalar_lea.vmem %s41_s9, 4096  ;;  %p2715_p6 = scmp.lt.s32.totalorder %s41_s9, %s41_s9 }
  0x11   :  { %p2711_p5 = scmp.ne.s32.totalorder %s41_s9, %s2710_s10  ;;  %p2716_p7 = scmp.lt.s32.totalorder %s2710_s10, %s2710_s10 }
  0x13   :  { %p2717_p8 = por %p2716_p7, %p2715_p6 }
  0x15   :  { %p2718_p9 = pnand %p2717_p8, %p2711_p5 }
  0x17   :  { %2721 = shalt.err (!%p2718_p9)
}
  0x18   :  { %s2752_s11 = smov 64   ;;  %s2753_s12 = smov 4  }
  0x19   :  { %46 = dma.hbm_to_vmem [thread:$0]  %s3049_s5, 4096, %s41_s9, [#allocation7], %s2752_s11, %s2752_s11, %s2753_s12  }
  0x1a   :  { %2742 = dma.done.wait [#allocation4], 16384  }
  0x1b   :  { %2743 = vsyncadd [#allocation4], 4294950912 }
  0x1c   :  { %2744 = dma.done.wait [#allocation7], 4096  }
  0x1d   :  { %2745 = vsyncadd [#allocation7], 4294963200  ;;  %v2754_v0 = vmov 0   ;;  %v2421_v1 = vld [vmem:[%s3045_s1 + $0x64] ss:$16 sps:$4 sm:$0xff]   ;;  %vm179_vm0 = vcmask 523264  }
  0x1e   :  { %239 = vmatprep.mubr.bf16.mxu0 %v2754_v0  ;;  %540 = vmatprep.mubr.bf16.mxu1 %v2754_v0  ;;  %v2423_v2 = vld [vmem:[%s3045_s1 + $0x6c] ss:$16 sps:$4 sm:$0xff]   ;;  %v2425_v3 = vld [vmem:[%s3045_s1 + $0x60] ss:$16 sps:$4 sm:$0xff]   ;;  %v2426_v4 = vld [vmem:[%s3045_s1 + $0x68] ss:$16 sps:$4 sm:$0xff]  }
  0x1f   :  { %215 = vmatprep.subr.bf16.mxu0 %v2421_v1  ;;  %516 = vmatprep.subr.bf16.mxu1 %v2423_v2  ;;  %v2427_v5 = vld [vmem:[%s3045_s1 + $0x44] ss:$16 sps:$4 sm:$0xff]   ;;  %v2429_v6 = vld [vmem:[%s3045_s1 + $0x4c] ss:$16 sps:$4 sm:$0xff]   ;;  %v2431_v7 = vld [vmem:[%s3045_s1 + $0x40] ss:$16 sps:$4 sm:$0xff]  }
  0x20   :  { %216 = vmatpush1.bf16.msra.mxu0 %v2425_v3  ;;  %517 = vmatpush1.bf16.msra.mxu1 %v2426_v4  ;;  %v2432_v8 = vld [vmem:[%s3045_s1 + $0x48] ss:$16 sps:$4 sm:$0xff]   ;;  %v2433_v9 = vld [vmem:[%s3045_s1 + $0x24] ss:$16 sps:$4 sm:$0xff]   ;;  %v2435_v10 = vld [vmem:[%s3045_s1 + $0x2c] ss:$16 sps:$4 sm:$0xff]  }
  0x21   :  { %217 = vmatprep.subr.bf16.mxu0 %v2427_v5  ;;  %518 = vmatprep.subr.bf16.mxu1 %v2429_v6  ;;  %v2437_v11 = vld [vmem:[%s3045_s1 + $0x20] ss:$16 sps:$4 sm:$0xff]   ;;  %v2438_v12 = vld [vmem:[%s3045_s1 + $0x28] ss:$16 sps:$4 sm:$0xff]   ;;  %v2439_v13 = vld [vmem:[%s3045_s1 + $0x4] ss:$16 sps:$4 sm:$0xff]  }
  0x22   :  { %v2441_v14 = vld [vmem:[%s3045_s1 + $0xc] ss:$16 sps:$4 sm:$0xff]   ;;  %v2443_v15 = vld [vmem:[%s3045_s1] ss:$16 sps:$4 sm:$0xff]   ;;  %v2444_v16 = vld [vmem:[%s3045_s1 + $0x8] ss:$16 sps:$4 sm:$0xff]  }
  0x23   :  { %v2445_v17 = vld [vmem:[%s3044_s0] sm:$0xff]   ;;  %v2446_v18 = vld [vmem:[%s3044_s0 + $0x8] sm:$0xff]   ;;  %v2447_v19 = vld [vmem:[%s3044_s0 + $0x10] sm:$0xff]  }
  0x24   :  { %218 = vmatpush1.bf16.msra.mxu0 %v2431_v7  ;;  %519 = vmatpush1.bf16.msra.mxu1 %v2432_v8  ;;  %v2448_v20 = vld [vmem:[%s3044_s0 + $0x18] sm:$0xff]   ;;  %v2449_v21 = vld [vmem:[%s3044_s0 + $0x20] sm:$0xff]   ;;  %v2450_v22 = vld [vmem:[%s3044_s0 + $0x28] sm:$0xff]  }
  0x25   :  { %219 = vmatprep.subr.bf16.mxu0 %v2433_v9  ;;  %520 = vmatprep.subr.bf16.mxu1 %v2435_v10  ;;  %v2451_v23 = vld [vmem:[%s3044_s0 + $0x30] sm:$0xff]   ;;  %v2452_v24 = vld [vmem:[%s3044_s0 + $0x38] sm:$0xff]   ;;  %v2453_v25 = vld [vmem:[%s3044_s0 + $0x40] sm:$0xff]  }
  0x26   :  { %v2454_v26 = vld [vmem:[#allocation3 + $0xe0] ss:$16 sps:$4 sm:$0xff]   ;;  %v2456_v27 = vld [vmem:[#allocation3 + $0xe4] ss:$16 sps:$4 sm:$0xff]  }
  0x27   :  { %v2459_v28 = vld [vmem:[#allocation3 + $0x2e4] ss:$16 sps:$4 sm:$0xff]   ;;  %v2457_v29 = vld [vmem:[#allocation3 + $0x2e0] ss:$16 sps:$4 sm:$0xff]  }
  0x28   :  { %220 = vmatpush1.bf16.msra.mxu0 %v2437_v11  ;;  %521 = vmatpush1.bf16.msra.mxu1 %v2438_v12  ;;  %v2462_v30 = vld [vmem:[#allocation3 + $0xc4] ss:$16 sps:$4 sm:$0xff]   ;;  %v2460_v32 = vld [vmem:[#allocation3 + $0xc0] ss:$16 sps:$4 sm:$0xff]  }
  0x29   :  { %221 = vmatprep.subr.bf16.mxu0 %v2439_v13  ;;  %522 = vmatprep.subr.bf16.mxu1 %v2441_v14  ;;  %v2465_v31 = vld [vmem:[#allocation3 + $0x2c4] ss:$16 sps:$4 sm:$0xff]   ;;  %v2463_v33 = vld [vmem:[#allocation3 + $0x2c0] ss:$16 sps:$4 sm:$0xff]  }
  0x2a   :  { %v2468_v34 = vld [vmem:[#allocation3 + $0xa4] ss:$16 sps:$4 sm:$0xff]   ;;  %v2466_v36 = vld [vmem:[#allocation3 + $0xa0] ss:$16 sps:$4 sm:$0xff]  }
  0x2b   :  { %v2471_v35 = vld [vmem:[#allocation3 + $0x2a4] ss:$16 sps:$4 sm:$0xff]   ;;  %v2469_v37 = vld [vmem:[#allocation3 + $0x2a0] ss:$16 sps:$4 sm:$0xff]  }
  0x2c   :  { %222 = vmatpush1.bf16.msra.mxu0 %v2443_v15  ;;  %523 = vmatpush1.bf16.msra.mxu1 %v2444_v16  ;;  %v2474_v38 = vld [vmem:[#allocation3 + $0x84] ss:$16 sps:$4 sm:$0xff]   ;;  %v2472_v40 = vld [vmem:[#allocation3 + $0x80] ss:$16 sps:$4 sm:$0xff]  }
  0x2d   :  { %1563 = vmatprep.subr.bf16.mxu0 %v2456_v27  ;;  %1606 = vmatprep.subr.bf16.mxu1 %v2459_v28  ;;  %v2477_v39 = vld [vmem:[#allocation3 + $0x284] ss:$16 sps:$4 sm:$0xff]   ;;  %v2475_v41 = vld [vmem:[#allocation3 + $0x280] ss:$16 sps:$4 sm:$0xff]   ;;  %v2555_v27 = vld [vmem:[#allocation3 + $0x2ec] ss:$16 sps:$4 sm:$0xff]   ;;  %v84_v28 = vlaneseq }
  0x2e   :  { %v2480_v42 = vld [vmem:[#allocation3 + $0x64] ss:$16 sps:$4 sm:$0xff]   ;;  %v2478_v44 = vld [vmem:[#allocation3 + $0x60] ss:$16 sps:$4 sm:$0xff]  }
  0x2f   :  { %2157 = vmatmul.mubr.msk.bf16.vlgmr.msra.gmra.mxu0 %vm179_vm0, %v2445_v17  ;;  %2176 = vmatmul.mubr.msk.bf16.vlgmr.msra.gmra.mxu1 %vm179_vm0, %v2445_v17  ;;  %v2483_v43 = vld [vmem:[#allocation3 + $0x264] ss:$16 sps:$4 sm:$0xff]   ;;  %v2481_v45 = vld [vmem:[#allocation3 + $0x260] ss:$16 sps:$4 sm:$0xff]  }
  0x30   :  { %249 = vmatprep.mubr.bf16.mxu0 %v2754_v0  ;;  %550 = vmatprep.mubr.bf16.mxu1 %v2754_v0  ;;  %v2486_v46 = vld [vmem:[#allocation3 + $0x44] ss:$16 sps:$4 sm:$0xff]   ;;  %v2484_v48 = vld [vmem:[#allocation3 + $0x40] ss:$16 sps:$4 sm:$0xff]  }
  0x31   :  { %1564 = vmatpush1.bf16.msra.mxu0 %v2454_v26  ;;  %1607 = vmatpush1.bf16.msra.mxu1 %v2457_v29  ;;  %v2489_v47 = vld [vmem:[#allocation3 + $0x244] ss:$16 sps:$4 sm:$0xff]   ;;  %v2487_v49 = vld [vmem:[#allocation3 + $0x240] ss:$16 sps:$4 sm:$0xff]   ;;  %v2552_v26 = vld [vmem:[#allocation3 + $0xec] ss:$16 sps:$4 sm:$0xff]  }
  0x32   :  { %1565 = vmatprep.subr.bf16.mxu0 %v2462_v30  ;;  %1608 = vmatprep.subr.bf16.mxu1 %v2465_v31  ;;  %v2492_v50 = vld [vmem:[#allocation3 + $0x24] ss:$16 sps:$4 sm:$0xff]   ;;  %v2490_v52 = vld [vmem:[#allocation3 + $0x20] ss:$16 sps:$4 sm:$0xff]   ;;  %v2916_v29 = vshrl.u32 %v84_v28, 7 }
  0x33   :  { %v2495_v51 = vld [vmem:[#allocation3 + $0x224] ss:$16 sps:$4 sm:$0xff]   ;;  %v2493_v53 = vld [vmem:[#allocation3 + $0x220] ss:$16 sps:$4 sm:$0xff]  }
  0x34   :  { %v2498_v54 = vld [vmem:[#allocation3 + $0x4] ss:$16 sps:$4 sm:$0xff]   ;;  %v2496_v56 = vld [vmem:[#allocation3] ss:$16 sps:$4 sm:$0xff]   ;;  %v2919_v30 = vsub.s32 0, %v2916_v29  ;;  %v2922_v31 = vsub.s32 1, %v2916_v29 }
  0x35   :  { %1566 = vmatpush1.bf16.msra.mxu0 %v2460_v32  ;;  %1609 = vmatpush1.bf16.msra.mxu1 %v2463_v33  ;;  %v2501_v55 = vld [vmem:[#allocation3 + $0x204] ss:$16 sps:$4 sm:$0xff]   ;;  %v2499_v57 = vld [vmem:[#allocation3 + $0x200] ss:$16 sps:$4 sm:$0xff]  }
  0x36   :  { %1567 = vmatprep.subr.bf16.mxu0 %v2468_v34  ;;  %1610 = vmatprep.subr.bf16.mxu1 %v2471_v35  ;;  %v2504_v58 = vld [vmem:[#allocation3 + $0x1e4] ss:$16 sps:$4 sm:$0xff]   ;;  %v2502_v60 = vld [vmem:[#allocation3 + $0x1e0] ss:$16 sps:$4 sm:$0xff]  }
  0x37   :  { %2158 = vmatmul.mubr.msk.bf16.gmra.mxu0 %vm179_vm0, %v2446_v18  ;;  %2177 = vmatmul.mubr.msk.bf16.gmra.mxu1 %vm179_vm0, %v2446_v18  ;;  %v2507_v59 = vld [vmem:[#allocation3 + $0x3e4] ss:$16 sps:$4 sm:$0xff]   ;;  %v2505_v61 = vld [vmem:[#allocation3 + $0x3e0] ss:$16 sps:$4 sm:$0xff]  }
  0x38   :  { %259 = vmatprep.mubr.bf16.mxu0 %v2754_v0  ;;  %560 = vmatprep.mubr.bf16.mxu1 %v2754_v0  ;;  %v2510_v62 = vld [vmem:[#allocation3 + $0x1c4] ss:$16 sps:$4 sm:$0xff]   ;;  %v2511_v1 = vld [vmem:[#allocation3 + $0x3c0] ss:$16 sps:$4 sm:$0xff]  }
  0x39   :  { %1568 = vmatpush1.bf16.msra.mxu0 %v2466_v36  ;;  %1611 = vmatpush1.bf16.msra.mxu1 %v2469_v37  ;;  %v2513_v63 = vld [vmem:[#allocation3 + $0x3c4] ss:$16 sps:$4 sm:$0xff]   ;;  %v2514_v4 = vld [vmem:[#allocation3 + $0x1a0] ss:$16 sps:$4 sm:$0xff]  }
  0x3a   :  { %1569 = vmatprep.subr.bf16.mxu0 %v2474_v38  ;;  %1612 = vmatprep.subr.bf16.mxu1 %v2477_v39  ;;  %v2516_v2 = vld [vmem:[#allocation3 + $0x1a4] ss:$16 sps:$4 sm:$0xff]   ;;  %v2517_v5 = vld [vmem:[#allocation3 + $0x3a0] ss:$16 sps:$4 sm:$0xff]  }
  0x3b   :  { %v2519_v3 = vld [vmem:[#allocation3 + $0x3a4] ss:$16 sps:$4 sm:$0xff]   ;;  %v2520_v8 = vld [vmem:[#allocation3 + $0x180] ss:$16 sps:$4 sm:$0xff]  }
  0x3c   :  { %v2522_v6 = vld [vmem:[#allocation3 + $0x184] ss:$16 sps:$4 sm:$0xff]   ;;  %v2523_v9 = vld [vmem:[#allocation3 + $0x380] ss:$16 sps:$4 sm:$0xff]  }
  0x3d   :  { %1570 = vmatpush1.bf16.msra.mxu0 %v2472_v40  ;;  %1613 = vmatpush1.bf16.msra.mxu1 %v2475_v41  ;;  %v2525_v7 = vld [vmem:[#allocation3 + $0x384] ss:$16 sps:$4 sm:$0xff]   ;;  %v2526_v12 = vld [vmem:[#allocation3 + $0x160] ss:$16 sps:$4 sm:$0xff]  }
  0x3e   :  { %1571 = vmatprep.subr.bf16.mxu0 %v2480_v42  ;;  %1614 = vmatprep.subr.bf16.mxu1 %v2483_v43  ;;  %v2528_v10 = vld [vmem:[#allocation3 + $0x164] ss:$16 sps:$4 sm:$0xff]   ;;  %v2529_v13 = vld [vmem:[#allocation3 + $0x360] ss:$16 sps:$4 sm:$0xff]  }
  0x3f   :  { %2159 = vmatmul.mubr.msk.bf16.gmra.mxu0 %vm179_vm0, %v2447_v19  ;;  %2178 = vmatmul.mubr.msk.bf16.gmra.mxu1 %vm179_vm0, %v2447_v19  ;;  %v2531_v11 = vld [vmem:[#allocation3 + $0x364] ss:$16 sps:$4 sm:$0xff]   ;;  %v2532_v16 = vld [vmem:[#allocation3 + $0x140] ss:$16 sps:$4 sm:$0xff]  }
  0x40   :  { %269 = vmatprep.mubr.bf16.mxu0 %v2754_v0  ;;  %570 = vmatprep.mubr.bf16.mxu1 %v2754_v0  ;;  %v2534_v14 = vld [vmem:[#allocation3 + $0x144] ss:$16 sps:$4 sm:$0xff]   ;;  %v2535_v17 = vld [vmem:[#allocation3 + $0x340] ss:$16 sps:$4 sm:$0xff]  }
  0x41   :  { %1572 = vmatpush1.bf16.msra.mxu0 %v2478_v44  ;;  %1615 = vmatpush1.bf16.msra.mxu1 %v2481_v45  ;;  %v2537_v15 = vld [vmem:[#allocation3 + $0x344] ss:$16 sps:$4 sm:$0xff]   ;;  %v82_v32 = vld [vmem:[%s3046_s2] sm:$0x3]  ;;  %v456_v34 = vld [vmem:[%s3046_s2 + $0x2] sm:$0x3] }
  0x42   :  { %1573 = vmatprep.subr.bf16.mxu0 %v2486_v46  ;;  %1616 = vmatprep.subr.bf16.mxu1 %v2489_v47  ;;  %v2540_v18 = vld [vmem:[#allocation3 + $0x124] ss:$16 sps:$4 sm:$0xff]   ;;  %v2931_v38 = vrot.slane %v82_v32, %v2919_v30  ;;  %v2934_v39 = vrot.slane %v456_v34, %v2919_v30  ;;  %v2937_v40 = vrot.slane %v82_v32, %v2922_v31 }
  0x43   :  { %v2543_v19 = vld [vmem:[#allocation3 + $0x324] ss:$16 sps:$4 sm:$0xff]   ;;  %v2940_v41 = vrot.slane %v456_v34, %v2922_v31 }
  0x45   :  { %1574 = vmatpush1.bf16.msra.mxu0 %v2484_v48  ;;  %1617 = vmatpush1.bf16.msra.mxu1 %v2487_v49 }
  0x46   :  { %1575 = vmatprep.subr.bf16.mxu0 %v2492_v50  ;;  %1618 = vmatprep.subr.bf16.mxu1 %v2495_v51 }
  0x47   :  { %2160 = vmatmul.mubr.msk.bf16.gmra.mxu0 %vm179_vm0, %v2448_v20  ;;  %2179 = vmatmul.mubr.msk.bf16.gmra.mxu1 %vm179_vm0, %v2448_v20  ;;  %v2538_v20 = vld [vmem:[#allocation3 + $0x120] ss:$16 sps:$4 sm:$0xff]  }
  0x48   :  { %279 = vmatprep.mubr.bf16.mxu0 %v2754_v0  ;;  %580 = vmatprep.mubr.bf16.mxu1 %v2754_v0 }
  0x49   :  { %1576 = vmatpush1.bf16.msra.mxu0 %v2490_v52  ;;  %1619 = vmatpush1.bf16.msra.mxu1 %v2493_v53 }
  0x4a   :  { %1577 = vmatprep.subr.bf16.mxu0 %v2498_v54  ;;  %1620 = vmatprep.subr.bf16.mxu1 %v2501_v55 }
  0x4d   :  { %1578 = vmatpush1.bf16.msra.mxu0 %v2496_v56  ;;  %1621 = vmatpush1.bf16.msra.mxu1 %v2499_v57 }
  0x4e   :  { %1579 = vmatprep.subr.bf16.mxu0 %v2504_v58  ;;  %1622 = vmatprep.subr.bf16.mxu1 %v2507_v59 }
  0x4f   :  { %2161 = vmatmul.mubr.msk.bf16.gmra.mxu0 %vm179_vm0, %v2449_v21  ;;  %2180 = vmatmul.mubr.msk.bf16.gmra.mxu1 %vm179_vm0, %v2449_v21  ;;  %v2541_v21 = vld [vmem:[#allocation3 + $0x320] ss:$16 sps:$4 sm:$0xff]  }
  0x50   :  { %289 = vmatprep.mubr.bf16.mxu0 %v2754_v0  ;;  %590 = vmatprep.mubr.bf16.mxu1 %v2754_v0 }
  0x51   :  { %1580 = vmatpush2.bf16.msra.mxu0 %v2502_v60  ;;  %1623 = vmatpush2.bf16.msra.mxu1 %v2505_v61 }
  0x52   :  { %1581 = vmatprep.subr.bf16.mxu0 %v2510_v62  ;;  %1624 = vmatprep.subr.bf16.mxu1 %v2513_v63 }
  0x55   :  { %1625 = vmatpush2.bf16.msra.mxu1 %v2511_v1 }
  0x56   :  { %1626 = vmatprep.subr.bf16.mxu1 %v2519_v3 }
  0x57   :  { %2162 = vmatmul.mubr.msk.bf16.gmra.mxu0 %vm179_vm0, %v2450_v22  ;;  %2181 = vmatmul.mubr.msk.bf16.gmra.mxu1 %vm179_vm0, %v2450_v22  ;;  %v2546_v22 = vld [vmem:[#allocation3 + $0x104] ss:$16 sps:$4 sm:$0xff]  }
  0x58   :  { %299 = vmatprep.mubr.bf16.mxu0 %v2754_v0  ;;  %600 = vmatprep.mubr.bf16.mxu1 %v2754_v0 }
  0x59   :  { %1627 = vmatpush2.bf16.msra.mxu1 %v2517_v5 }
  0x5a   :  { %1628 = vmatprep.subr.bf16.mxu1 %v2525_v7 }
  0x5d   :  { %1629 = vmatpush2.bf16.msra.mxu1 %v2523_v9 }
  0x5e   :  { %1630 = vmatprep.subr.bf16.mxu1 %v2531_v11 }
  0x5f   :  { %2163 = vmatmul.mubr.msk.bf16.gmra.mxu0 %vm179_vm0, %v2451_v23  ;;  %2182 = vmatmul.mubr.msk.bf16.gmra.mxu1 %vm179_vm0, %v2451_v23  ;;  %v2549_v23 = vld [vmem:[#allocation3 + $0x304] ss:$16 sps:$4 sm:$0xff]  }
  0x60   :  { %309 = vmatprep.mubr.bf16.mxu0 %v2754_v0  ;;  %610 = vmatprep.mubr.bf16.mxu1 %v2754_v0 }
  0x61   :  { %1631 = vmatpush2.bf16.msra.mxu1 %v2529_v13 }
  0x62   :  { %1632 = vmatprep.subr.bf16.mxu1 %v2537_v15 }
  0x65   :  { %1633 = vmatpush2.bf16.msra.mxu1 %v2535_v17 }
  0x66   :  { %1634 = vmatprep.subr.bf16.mxu1 %v2543_v19 }
  0x67   :  { %2164 = vmatmul.mubr.msk.bf16.gmra.mxu0 %vm179_vm0, %v2452_v24  ;;  %2183 = vmatmul.mubr.msk.bf16.gmra.mxu1 %vm179_vm0, %v2452_v24  ;;  %v2544_v24 = vld [vmem:[#allocation3 + $0x100] ss:$16 sps:$4 sm:$0xff]  }
  0x68   :  { %319 = vmatprep.mubr.bf16.mxu0 %v2754_v0  ;;  %620 = vmatprep.mubr.bf16.mxu1 %v2754_v0  ;;  %v2508_v0 = vld [vmem:[#allocation3 + $0x1c0] ss:$16 sps:$4 sm:$0xff]  }
  0x69   :  { %1582 = vmatpush2.bf16.msra.mxu0 %v2508_v0  ;;  %1635 = vmatpush2.bf16.msra.mxu1 %v2541_v21 }
  0x6a   :  { %1583 = vmatprep.subr.bf16.mxu0 %v2516_v2  ;;  %1636 = vmatprep.subr.bf16.mxu1 %v2549_v23 }
  0x6d   :  { %1584 = vmatpush2.bf16.msra.mxu0 %v2514_v4 }
  0x6e   :  { %1585 = vmatprep.subr.bf16.mxu0 %v2522_v6 }
  0x6f   :  { %2165 = vmatmul.mubr.msk.bf16.gmra.mxu0 %vm179_vm0, %v2453_v25  ;;  %2184 = vmatmul.mubr.msk.bf16.gmra.mxu1 %vm179_vm0, %v2453_v25  ;;  %v2547_v25 = vld [vmem:[#allocation3 + $0x300] ss:$16 sps:$4 sm:$0xff]  }
  0x70   :  { %1637 = vmatpush2.bf16.msra.mxu1 %v2547_v25 }
  0x71   :  { %1586 = vmatpush2.bf16.msra.mxu0 %v2520_v8  ;;  %1692 = vmatprep.subr.bf16.mxu1 %v2555_v27 }
  0x72   :  { %1587 = vmatprep.subr.bf16.mxu0 %v2528_v10 }
  0x75   :  { %1588 = vmatpush2.bf16.msra.mxu0 %v2526_v12 }
  0x76   :  { %1589 = vmatprep.subr.bf16.mxu0 %v2534_v14 }
  0x79   :  { %1590 = vmatpush2.bf16.msra.mxu0 %v2532_v16 }
  0x7a   :  { %1591 = vmatprep.subr.bf16.mxu0 %v2540_v18 }
  0x7d   :  { %1592 = vmatpush2.bf16.msra.mxu0 %v2538_v20 }
  0x7e   :  { %1593 = vmatprep.subr.bf16.mxu0 %v2546_v22 }
  0x81   :  { %1594 = vmatpush2.bf16.msra.mxu0 %v2544_v24 }
  0x82   :  { %1649 = vmatprep.subr.bf16.mxu0 %v2552_v26 }
  0xef   :  { %v241_v33 = vpop.f32.mrf.mxu0  ;;  %v542_v35 = vpop.f32.mrf.mxu1 }
  0xf0   :  { %v242_v46 = vadd.f32 %v241_v33, %v2931_v38  ;;  %v543_v47 = vadd.f32 %v542_v35, %v2934_v39 }
  0xf1   :  { %v243_v36 = vpop.f32.mrf.mxu0  ;;  %v544_v37 = vpop.f32.mrf.mxu1 }
  0xf2   :  { %v244_v48 = vadd.f32 %v243_v36, %v2937_v40  ;;  %v545_v49 = vadd.f32 %v544_v37, %v2940_v41  ;;  %v330_v58 = vmax.f32 %v242_v46, 0.0  ;;  %v631_v59 = vmax.f32 %v543_v47, 0.0 }
  0xf3   :  { %v245_v42 = vpop.f32.mrf.mxu0  ;;  %v546_v43 = vpop.f32.mrf.mxu1 }
  0xf4   :  { %v246_v52 = vadd.f32 %v245_v42, %v2931_v38  ;;  %v547_v53 = vadd.f32 %v546_v43, %v2934_v39  ;;  %v331_v60 = vmax.f32 %v244_v48, 0.0  ;;  %v632_v61 = vmax.f32 %v545_v49, 0.0 }
  0xf5   :  { %v247_v44 = vpop.f32.mrf.mxu0  ;;  %v548_v45 = vpop.f32.mrf.mxu1  ;;  %v366_v12 = vmin.f32 %v330_v58, 6.0  ;;  %v667_v13 = vmin.f32 %v631_v59, 6.0 }
  0xf6   :  { %v248_v62 = vadd.f32 %v247_v44, %v2937_v40  ;;  %v549_v63 = vadd.f32 %v548_v45, %v2940_v41  ;;  %v332_v2 = vmax.f32 %v246_v52, 0.0  ;;  %v633_v3 = vmax.f32 %v547_v53, 0.0 }
  0xf7   :  { %v251_v50 = vpop.f32.mrf.mxu0  ;;  %v552_v51 = vpop.f32.mrf.mxu1  ;;  %v367_v14 = vmin.f32 %v331_v60, 6.0  ;;  %v668_v15 = vmin.f32 %v632_v61, 6.0 }
  0xf8   :  { %v252_v54 = vadd.f32 %v251_v50, %v2931_v38  ;;  %v553_v55 = vadd.f32 %v552_v51, %v2934_v39  ;;  %v333_v16 = vmax.f32 %v248_v62, 0.0  ;;  %v634_v17 = vmax.f32 %v549_v63, 0.0 }
  0xf9   :  { %v253_v56 = vpop.f32.mrf.mxu0  ;;  %v554_v57 = vpop.f32.mrf.mxu1  ;;  %v368_v22 = vmin.f32 %v332_v2, 6.0  ;;  %v669_v23 = vmin.f32 %v633_v3, 6.0 }
  0xfa   :  { %v254_v4 = vadd.f32 %v253_v56, %v2937_v40  ;;  %v555_v5 = vadd.f32 %v554_v57, %v2940_v41  ;;  %v334_v6 = vmax.f32 %v252_v54, 0.0  ;;  %v635_v7 = vmax.f32 %v553_v55, 0.0 }
  0xfb   :  { %v255_v0 = vpop.f32.mrf.mxu0  ;;  %v556_v1 = vpop.f32.mrf.mxu1  ;;  %v369_v43 = vmin.f32 %v333_v16, 6.0  ;;  %v670_v44 = vmin.f32 %v634_v17, 6.0 }
  0xfc   :  { %v256_v8 = vadd.f32 %v255_v0, %v2931_v38  ;;  %v557_v9 = vadd.f32 %v556_v1, %v2934_v39  ;;  %v335_v24 = vmax.f32 %v254_v4, 0.0  ;;  %v636_v25 = vmax.f32 %v555_v5, 0.0 }
  0xfd   :  { %v257_v10 = vpop.f32.mrf.mxu0  ;;  %v558_v11 = vpop.f32.mrf.mxu1  ;;  %v370_v26 = vmin.f32 %v334_v6, 6.0  ;;  %v671_v27 = vmin.f32 %v635_v7, 6.0 }
  0xfe   :  { %v258_v18 = vadd.f32 %v257_v10, %v2937_v40  ;;  %v559_v19 = vadd.f32 %v558_v11, %v2940_v41  ;;  %v336_v28 = vmax.f32 %v256_v8, 0.0  ;;  %v637_v32 = vmax.f32 %v557_v9, 0.0 }
  0xff   :  { %v261_v20 = vpop.f32.mrf.mxu0  ;;  %v562_v21 = vpop.f32.mrf.mxu1  ;;  %v371_v49 = vmin.f32 %v335_v24, 6.0  ;;  %v672_v50 = vmin.f32 %v636_v25, 6.0  ;;  %v402_v53 = vadd.f32 %v370_v26, %v366_v12  ;;  %v703_v54 = vadd.f32 %v671_v27, %v667_v13 }
 0x100   :  { %v337_v35 = vmax.f32 %v258_v18, 0.0  ;;  %v638_v36 = vmax.f32 %v559_v19, 0.0  ;;  %v262_v37 = vadd.f32 %v261_v20, %v2931_v38  ;;  %v563_v42 = vadd.f32 %v562_v21, %v2934_v39 }
 0x101   :  { %v263_v33 = vpop.f32.mrf.mxu0  ;;  %v564_v34 = vpop.f32.mrf.mxu1  ;;  %v372_v55 = vmin.f32 %v336_v28, 6.0  ;;  %v673_v56 = vmin.f32 %v637_v32, 6.0  ;;  %v403_v5 = vadd.f32 %v371_v49, %v367_v14  ;;  %v704_v6 = vadd.f32 %v672_v50, %v668_v15 }
 0x102   :  { %v264_v45 = vadd.f32 %v263_v33, %v2937_v40  ;;  %v565_v46 = vadd.f32 %v564_v34, %v2940_v41  ;;  %v373_v59 = vmin.f32 %v337_v35, 6.0  ;;  %v674_v60 = vmin.f32 %v638_v36, 6.0 }
 0x103   :  { %v265_v47 = vpop.f32.mrf.mxu0  ;;  %v566_v48 = vpop.f32.mrf.mxu1  ;;  %v338_v61 = vmax.f32 %v262_v37, 0.0  ;;  %v639_v62 = vmax.f32 %v563_v42, 0.0  ;;  %v404_v9 = vadd.f32 %v372_v55, %v368_v22  ;;  %v705_v10 = vadd.f32 %v673_v56, %v669_v23 }
 0x104   :  { %v266_v51 = vadd.f32 %v265_v47, %v2931_v38  ;;  %v567_v52 = vadd.f32 %v566_v48, %v2934_v39  ;;  %v339_v63 = vmax.f32 %v264_v45, 0.0  ;;  %v640_v0 = vmax.f32 %v565_v46, 0.0 }
 0x105   :  { %v267_v57 = vpop.f32.mrf.mxu0  ;;  %v568_v58 = vpop.f32.mrf.mxu1  ;;  %v374_v17 = vmin.f32 %v338_v61, 6.0  ;;  %v675_v18 = vmin.f32 %v639_v62, 6.0  ;;  %v405_v21 = vadd.f32 %v373_v59, %v369_v43  ;;  %v706_v24 = vadd.f32 %v674_v60, %v670_v44 }
 0x106   :  { %v268_v1 = vadd.f32 %v267_v57, %v2937_v40  ;;  %v569_v2 = vadd.f32 %v568_v58, %v2940_v41  ;;  %v340_v7 = vmax.f32 %v266_v51, 0.0  ;;  %v641_v8 = vmax.f32 %v567_v52, 0.0 }
 0x107   :  { %v271_v3 = vpop.f32.mrf.mxu0  ;;  %v572_v4 = vpop.f32.mrf.mxu1  ;;  %v375_v25 = vmin.f32 %v339_v63, 6.0  ;;  %v676_v26 = vmin.f32 %v640_v0, 6.0  ;;  %v406_v42 = vadd.f32 %v402_v53, %v374_v17  ;;  %v707_v43 = vadd.f32 %v703_v54, %v675_v18 }
 0x108   :  { %v272_v11 = vadd.f32 %v271_v3, %v2931_v38  ;;  %v573_v12 = vadd.f32 %v572_v4, %v2934_v39  ;;  %v341_v19 = vmax.f32 %v268_v1, 0.0  ;;  %v642_v20 = vmax.f32 %v569_v2, 0.0 }
 0x109   :  { %v273_v13 = vpop.f32.mrf.mxu0  ;;  %v574_v16 = vpop.f32.mrf.mxu1  ;;  %v376_v27 = vmin.f32 %v340_v7, 6.0  ;;  %v677_v28 = vmin.f32 %v641_v8, 6.0  ;;  %v407_v46 = vadd.f32 %v403_v5, %v375_v25  ;;  %v708_v47 = vadd.f32 %v704_v6, %v676_v26 }
 0x10a   :  { %v274_v22 = vadd.f32 %v273_v13, %v2937_v40  ;;  %v575_v23 = vadd.f32 %v574_v16, %v2940_v41  ;;  %v342_v32 = vmax.f32 %v272_v11, 0.0  ;;  %v643_v33 = vmax.f32 %v573_v12, 0.0 }
 0x10b   :  { %v275_v14 = vpop.f32.mrf.mxu0  ;;  %v576_v15 = vpop.f32.mrf.mxu1  ;;  %v377_v44 = vmin.f32 %v341_v19, 6.0  ;;  %v678_v45 = vmin.f32 %v642_v20, 6.0  ;;  %v408_v52 = vadd.f32 %v404_v9, %v376_v27  ;;  %v709_v55 = vadd.f32 %v705_v10, %v677_v28 }
 0x10c   :  { %v276_v34 = vadd.f32 %v275_v14, %v2931_v38  ;;  %v577_v35 = vadd.f32 %v576_v15, %v2934_v39  ;;  %v343_v56 = vmax.f32 %v274_v22, 0.0  ;;  %v644_v57 = vmax.f32 %v575_v23, 0.0 }
 0x10d   :  { %v277_v36 = vpop.f32.mrf.mxu0  ;;  %v578_v37 = vpop.f32.mrf.mxu1  ;;  %v378_v58 = vmin.f32 %v342_v32, 6.0  ;;  %v679_v59 = vmin.f32 %v643_v33, 6.0  ;;  %v409_v62 = vadd.f32 %v405_v21, %v377_v44  ;;  %v710_v63 = vadd.f32 %v706_v24, %v678_v45 }
 0x10e   :  { %v278_v48 = vadd.f32 %v277_v36, %v2937_v40  ;;  %v579_v49 = vadd.f32 %v578_v37, %v2940_v41  ;;  %v344_v60 = vmax.f32 %v276_v34, 0.0  ;;  %v645_v61 = vmax.f32 %v577_v35, 0.0 }
 0x10f   :  { %v281_v50 = vpop.f32.mrf.mxu0  ;;  %v582_v51 = vpop.f32.mrf.mxu1  ;;  %v379_v8 = vmin.f32 %v343_v56, 6.0  ;;  %v680_v9 = vmin.f32 %v644_v57, 6.0  ;;  %v410_v12 = vadd.f32 %v406_v42, %v378_v58  ;;  %v711_v13 = vadd.f32 %v707_v43, %v679_v59 }
 0x110   :  { %v282_v0 = vadd.f32 %v281_v50, %v2931_v38  ;;  %v583_v1 = vadd.f32 %v582_v51, %v2934_v39  ;;  %v345_v2 = vmax.f32 %v278_v48, 0.0  ;;  %v646_v3 = vmax.f32 %v579_v49, 0.0 }
 0x111   :  { %v283_v53 = vpop.f32.mrf.mxu0  ;;  %v584_v54 = vpop.f32.mrf.mxu1  ;;  %v380_v16 = vmin.f32 %v344_v60, 6.0  ;;  %v681_v17 = vmin.f32 %v645_v61, 6.0  ;;  %v411_v23 = vadd.f32 %v407_v46, %v379_v8  ;;  %v712_v32 = vadd.f32 %v708_v47, %v680_v9 }
 0x112   :  { %v284_v4 = vadd.f32 %v283_v53, %v2937_v40  ;;  %v585_v5 = vadd.f32 %v584_v54, %v2940_v41  ;;  %v346_v20 = vmax.f32 %v282_v0, 0.0  ;;  %v647_v21 = vmax.f32 %v583_v1, 0.0 }
 0x113   :  { %v285_v6 = vpop.f32.mrf.mxu0  ;;  %v586_v7 = vpop.f32.mrf.mxu1  ;;  %v381_v26 = vmin.f32 %v345_v2, 6.0  ;;  %v682_v14 = vmin.f32 %v646_v3, 6.0  ;;  %v412_v35 = vadd.f32 %v408_v52, %v380_v16  ;;  %v713_v36 = vadd.f32 %v709_v55, %v681_v17 }
 0x114   :  { %v286_v10 = vadd.f32 %v285_v6, %v2931_v38  ;;  %v587_v11 = vadd.f32 %v586_v7, %v2934_v39  ;;  %v347_v24 = vmax.f32 %v284_v4, 0.0  ;;  %v648_v25 = vmax.f32 %v585_v5, 0.0 }
 0x115   :  { %v287_v18 = vpop.f32.mrf.mxu0  ;;  %v588_v19 = vpop.f32.mrf.mxu1  ;;  %v382_v45 = vmin.f32 %v346_v20, 6.0  ;;  %v683_v48 = vmin.f32 %v647_v21, 6.0  ;;  %v413_v51 = vadd.f32 %v409_v62, %v381_v26  ;;  %v714_v56 = vadd.f32 %v710_v63, %v682_v14 }
 0x116   :  { %v288_v15 = vadd.f32 %v287_v18, %v2937_v40  ;;  %v589_v27 = vadd.f32 %v588_v19, %v2940_v41  ;;  %v348_v33 = vmax.f32 %v286_v10, 0.0  ;;  %v649_v34 = vmax.f32 %v587_v11, 0.0 }
 0x117   :  { %v291_v28 = vpop.f32.mrf.mxu0  ;;  %v592_v22 = vpop.f32.mrf.mxu1  ;;  %v383_v49 = vmin.f32 %v347_v24, 6.0  ;;  %v684_v50 = vmin.f32 %v648_v25, 6.0  ;;  %v414_v62 = vadd.f32 %v410_v12, %v382_v45  ;;  %v715_v63 = vadd.f32 %v711_v13, %v683_v48 }
 0x118   :  { %v292_v37 = vadd.f32 %v291_v28, %v2931_v38  ;;  %v593_v42 = vadd.f32 %v592_v22, %v2934_v39  ;;  %v349_v57 = vmax.f32 %v288_v15, 0.0  ;;  %v650_v58 = vmax.f32 %v589_v27, 0.0 }
 0x119   :  { %v293_v43 = vpop.f32.mrf.mxu0  ;;  %v594_v44 = vpop.f32.mrf.mxu1  ;;  %v384_v59 = vmin.f32 %v348_v33, 6.0  ;;  %v685_v60 = vmin.f32 %v649_v34, 6.0  ;;  %v415_v3 = vadd.f32 %v411_v23, %v383_v49  ;;  %v716_v4 = vadd.f32 %v712_v32, %v684_v50 }
 0x11a   :  { %v294_v52 = vadd.f32 %v293_v43, %v2937_v40  ;;  %v595_v55 = vadd.f32 %v594_v44, %v2940_v41  ;;  %v350_v61 = vmax.f32 %v292_v37, 0.0  ;;  %v651_v53 = vmax.f32 %v593_v42, 0.0 }
 0x11b   :  { %v295_v46 = vpop.f32.mrf.mxu0  ;;  %v596_v47 = vpop.f32.mrf.mxu1  ;;  %v385_v5 = vmin.f32 %v349_v57, 6.0  ;;  %v686_v6 = vmin.f32 %v650_v58, 6.0  ;;  %v416_v11 = vadd.f32 %v412_v35, %v384_v59  ;;  %v717_v16 = vadd.f32 %v713_v36, %v685_v60 }
 0x11c   :  { %v296_v54 = vadd.f32 %v295_v46, %v2931_v38  ;;  %v597_v0 = vadd.f32 %v596_v47, %v2934_v39  ;;  %v351_v17 = vmax.f32 %v294_v52, 0.0  ;;  %v652_v18 = vmax.f32 %v595_v55, 0.0 }
 0x11d   :  { %v297_v1 = vpop.f32.mrf.mxu0  ;;  %v598_v2 = vpop.f32.mrf.mxu1  ;;  %v386_v19 = vmin.f32 %v350_v61, 6.0  ;;  %v687_v20 = vmin.f32 %v651_v53, 6.0  ;;  %v417_v27 = vadd.f32 %v413_v51, %v385_v5  ;;  %v718_v28 = vadd.f32 %v714_v56, %v686_v6 }
 0x11e   :  { %v298_v7 = vadd.f32 %v297_v1, %v2937_v40  ;;  %v599_v8 = vadd.f32 %v598_v2, %v2940_v41  ;;  %v352_v21 = vmax.f32 %v296_v54, 0.0  ;;  %v653_v24 = vmax.f32 %v597_v0, 0.0 }
 0x11f   :  { %v301_v9 = vpop.f32.mrf.mxu0  ;;  %v602_v10 = vpop.f32.mrf.mxu1  ;;  %v387_v34 = vmin.f32 %v351_v17, 6.0  ;;  %v688_v35 = vmin.f32 %v652_v18, 6.0  ;;  %v418_v42 = vadd.f32 %v414_v62, %v386_v19  ;;  %v719_v43 = vadd.f32 %v715_v63, %v687_v20 }
 0x120   :  { %v353_v25 = vmax.f32 %v298_v7, 0.0  ;;  %v654_v26 = vmax.f32 %v599_v8, 0.0  ;;  %v302_v14 = vadd.f32 %v301_v9, %v2931_v38  ;;  %v603_v15 = vadd.f32 %v602_v10, %v2934_v39 }
 0x121   :  { %v303_v12 = vpop.f32.mrf.mxu0  ;;  %v604_v13 = vpop.f32.mrf.mxu1  ;;  %v388_v44 = vmin.f32 %v352_v21, 6.0  ;;  %v689_v45 = vmin.f32 %v653_v24, 6.0  ;;  %v419_v55 = vadd.f32 %v415_v3, %v387_v34  ;;  %v720_v61 = vadd.f32 %v716_v4, %v688_v35 }
 0x122   :  { %v304_v22 = vadd.f32 %v303_v12, %v2937_v40  ;;  %v605_v23 = vadd.f32 %v604_v13, %v2940_v41  ;;  %v389_v50 = vmin.f32 %v353_v25, 6.0  ;;  %v690_v51 = vmin.f32 %v654_v26, 6.0 }
 0x123   :  { %v305_v32 = vpop.f32.mrf.mxu0  ;;  %v606_v33 = vpop.f32.mrf.mxu1  ;;  %v354_v56 = vmax.f32 %v302_v14, 0.0  ;;  %v655_v57 = vmax.f32 %v603_v15, 0.0  ;;  %v420_v0 = vadd.f32 %v416_v11, %v388_v44  ;;  %v721_v1 = vadd.f32 %v717_v16, %v689_v45 }
 0x124   :  { %v306_v36 = vadd.f32 %v305_v32, %v2931_v38  ;;  %v607_v37 = vadd.f32 %v606_v33, %v2934_v39  ;;  %v355_v58 = vmax.f32 %v304_v22, 0.0  ;;  %v656_v46 = vmax.f32 %v605_v23, 0.0 }
 0x125   :  { %v307_v48 = vpop.f32.mrf.mxu0  ;;  %v608_v49 = vpop.f32.mrf.mxu1  ;;  %v390_v6 = vmin.f32 %v354_v56, 6.0  ;;  %v691_v7 = vmin.f32 %v655_v57, 6.0  ;;  %v421_v10 = vadd.f32 %v417_v27, %v389_v50  ;;  %v722_v17 = vadd.f32 %v718_v28, %v690_v51 }
 0x126   :  { %v308_v47 = vadd.f32 %v307_v48, %v2937_v40  ;;  %v609_v59 = vadd.f32 %v608_v49, %v2940_v41  ;;  %v356_v53 = vmax.f32 %v306_v36, 0.0  ;;  %v657_v54 = vmax.f32 %v607_v37, 0.0 }
 0x127   :  { %v311_v60 = vpop.f32.mrf.mxu0  ;;  %v612_v52 = vpop.f32.mrf.mxu1  ;;  %v391_v18 = vmin.f32 %v355_v58, 6.0  ;;  %v692_v19 = vmin.f32 %v656_v46, 6.0  ;;  %v3004_v15 = vadd.f32 %v418_v42, %v390_v6  ;;  %v3006_v27 = vadd.f32 %v719_v43, %v691_v7 }
 0x128   :  { %v312_v2 = vadd.f32 %v311_v60, %v2931_v38  ;;  %v613_v62 = vadd.f32 %v612_v52, %v2934_v39  ;;  %v357_v8 = vmax.f32 %v308_v47, 0.0  ;;  %v658_v9 = vmax.f32 %v609_v59, 0.0 }
 0x129   :  { %v313_v63 = vpop.f32.mrf.mxu0  ;;  %v614_v5 = vpop.f32.mrf.mxu1  ;;  %v392_v20 = vmin.f32 %v356_v53, 6.0  ;;  %v693_v21 = vmin.f32 %v657_v54, 6.0  ;;  %v423_v23 = vadd.f32 %v419_v55, %v391_v18  ;;  %v724_v32 = vadd.f32 %v720_v61, %v692_v19 }
 0x12a   :  { %v314_v11 = vadd.f32 %v313_v63, %v2937_v40  ;;  %v615_v16 = vadd.f32 %v614_v5, %v2940_v41  ;;  %v358_v24 = vmax.f32 %v312_v2, 0.0  ;;  %v659_v12 = vmax.f32 %v613_v62, 0.0 }
 0x12b   :  { %v315_v3 = vpop.f32.mrf.mxu0  ;;  %v616_v4 = vpop.f32.mrf.mxu1  ;;  %v393_v28 = vmin.f32 %v357_v8, 6.0  ;;  %v694_v22 = vmin.f32 %v658_v9, 6.0  ;;  %v424_v37 = vadd.f32 %v420_v0, %v392_v20  ;;  %v725_v44 = vadd.f32 %v721_v1, %v693_v21 }
 0x12c   :  { %v316_v13 = vadd.f32 %v315_v3, %v2931_v38  ;;  %v617_v25 = vadd.f32 %v616_v4, %v2934_v39  ;;  %v359_v45 = vmax.f32 %v314_v11, 0.0  ;;  %v660_v48 = vmax.f32 %v615_v16, 0.0 }
 0x12d   :  { %v317_v26 = vpop.f32.mrf.mxu0  ;;  %v618_v14 = vpop.f32.mrf.mxu1  ;;  %v394_v49 = vmin.f32 %v358_v24, 6.0  ;;  %v695_v50 = vmin.f32 %v659_v12, 6.0  ;;  %v425_v57 = vadd.f32 %v421_v10, %v393_v28  ;;  %v726_v58 = vadd.f32 %v722_v17, %v694_v22 }
 0x12e   :  { %v318_v33 = vadd.f32 %v317_v26, %v2937_v40  ;;  %v619_v34 = vadd.f32 %v618_v14, %v2940_v41  ;;  %v360_v42 = vmax.f32 %v316_v13, 0.0  ;;  %v661_v51 = vmax.f32 %v617_v25, 0.0 }
 0x12f   :  { %v321_v35 = vpop.f32.mrf.mxu0  ;;  %v622_v36 = vpop.f32.mrf.mxu1  ;;  %v395_v54 = vmin.f32 %v359_v45, 6.0  ;;  %v696_v0 = vmin.f32 %v660_v48, 6.0 }
 0x130   :  { %v322_v46 = vadd.f32 %v321_v35, %v2931_v38  ;;  %v623_v47 = vadd.f32 %v622_v36, %v2934_v39  ;;  %v361_v59 = vmax.f32 %v318_v33, 0.0  ;;  %v662_v60 = vmax.f32 %v619_v34, 0.0 }
 0x131   :  { %v323_v43 = vpop.f32.mrf.mxu0  ;;  %v624_v56 = vpop.f32.mrf.mxu1  ;;  %v396_v62 = vmin.f32 %v360_v42, 6.0  ;;  %v697_v63 = vmin.f32 %v661_v51, 6.0  ;;  %v427_v21 = vadd.f32 %v423_v23, %v395_v54  ;;  %v2571_v54 = vld [vmem:[#allocation3 + $0x288] ss:$16 sps:$4 sm:$0xff]  }
 0x132   :  { %v324_v52 = vadd.f32 %v323_v43, %v2937_v40  ;;  %v625_v55 = vadd.f32 %v624_v56, %v2940_v41  ;;  %v362_v9 = vmax.f32 %v322_v46, 0.0  ;;  %v663_v10 = vmax.f32 %v623_v47, 0.0  ;;  %v2550_v56 = vld [vmem:[#allocation3 + $0xe8] ss:$16 sps:$4 sm:$0xff]   ;;  %v2564_v47 = vld [vmem:[#allocation3 + $0xac] ss:$16 sps:$4 sm:$0xff]  }
 0x133   :  { %v325_v61 = vpop.f32.mrf.mxu0  ;;  %v626_v53 = vpop.f32.mrf.mxu1  ;;  %v397_v19 = vmin.f32 %v361_v59, 6.0  ;;  %v698_v3 = vmin.f32 %v662_v60, 6.0  ;;  %v428_v25 = vadd.f32 %v424_v37, %v396_v62  ;;  %v729_v26 = vadd.f32 %v725_v44, %v697_v63  ;;  %v2553_v46 = vld [vmem:[#allocation3 + $0x2e8] ss:$16 sps:$4 sm:$0xff]   ;;  %v2567_v59 = vld [vmem:[#allocation3 + $0x2ac] ss:$16 sps:$4 sm:$0xff]  }
 0x134   :  { %v326_v1 = vadd.f32 %v325_v61, %v2931_v38  ;;  %v627_v2 = vadd.f32 %v626_v53, %v2934_v39  ;;  %v363_v5 = vmax.f32 %v324_v52, 0.0  ;;  %v664_v6 = vmax.f32 %v625_v55, 0.0  ;;  %v2562_v60 = vld [vmem:[#allocation3 + $0xa8] ss:$16 sps:$4 sm:$0xff]   ;;  %v2570_v55 = vld [vmem:[#allocation3 + $0x8c] ss:$16 sps:$4 sm:$0xff]  }
 0x135   :  { %v327_v7 = vpop.f32.mrf.mxu0  ;;  %v628_v8 = vpop.f32.mrf.mxu1  ;;  %v728_v38 = vadd.f32 %v724_v32, %v696_v0  ;;  %v398_v14 = vmin.f32 %v362_v9, 6.0  ;;  %v699_v28 = vmin.f32 %v663_v10, 6.0  ;;  %v429_v22 = vadd.f32 %v425_v57, %v397_v19  ;;  %v2565_v52 = vld [vmem:[#allocation3 + $0x2a8] ss:$16 sps:$4 sm:$0xff]   ;;  %v2573_v61 = vld [vmem:[#allocation3 + $0x28c] ss:$16 sps:$4 sm:$0xff]  }
 0x136   :  { %v364_v17 = vmax.f32 %v326_v1, 0.0  ;;  %v665_v18 = vmax.f32 %v627_v2, 0.0  ;;  %v328_v4 = vadd.f32 %v327_v7, %v2937_v40  ;;  %v629_v20 = vadd.f32 %v628_v8, %v2940_v41  ;;  %v2568_v53 = vld [vmem:[#allocation3 + $0x88] ss:$16 sps:$4 sm:$0xff]   ;;  %v2576_v0 = vld [vmem:[#allocation3 + $0x6c] ss:$16 sps:$4 sm:$0xff]  }
 0x137   :  { %v399_v16 = vmin.f32 %v363_v5, 6.0  ;;  %v700_v24 = vmin.f32 %v664_v6, 6.0  ;;  %v730_v33 = vadd.f32 %v726_v58, %v698_v3  ;;  %v426_v40 = vadd.f32 %v3004_v15, %v394_v49  ;;  %v2558_v15 = vld [vmem:[#allocation3 + $0xcc] ss:$16 sps:$4 sm:$0xff]   ;;  %v2556_v49 = vld [vmem:[#allocation3 + $0xc8] ss:$16 sps:$4 sm:$0xff]  }
 0x138   :  { %v400_v11 = vmin.f32 %v364_v17, 6.0  ;;  %v701_v39 = vmin.f32 %v665_v18, 6.0  ;;  %v365_v12 = vmax.f32 %v328_v4, 0.0  ;;  %v666_v13 = vmax.f32 %v629_v20, 0.0  ;;  %v2579_v1 = vld [vmem:[#allocation3 + $0x26c] ss:$16 sps:$4 sm:$0xff]  }
 0x139   :  { %v727_v41 = vadd.f32 %v3006_v27, %v695_v50  ;;  %v431_v36 = vadd.f32 %v427_v21, %v399_v16  ;;  %v732_v45 = vadd.f32 %v728_v38, %v700_v24  ;;  %v430_v51 = vadd.f32 %v426_v40, %v398_v14  ;;  %v2561_v27 = vld [vmem:[#allocation3 + $0x2cc] ss:$16 sps:$4 sm:$0xff]   ;;  %v2559_v50 = vld [vmem:[#allocation3 + $0x2c8] ss:$16 sps:$4 sm:$0xff]  }
 0x13a   :  { %v401_v34 = vmin.f32 %v365_v12, 6.0  ;;  %v702_v35 = vmin.f32 %v666_v13, 6.0  ;;  %v432_v23 = vadd.f32 %v428_v25, %v400_v11  ;;  %v733_v32 = vadd.f32 %v729_v26, %v701_v39  ;;  %v2574_v2 = vld [vmem:[#allocation3 + $0x68] ss:$16 sps:$4 sm:$0xff]   ;;  %v2582_v63 = vld [vmem:[#allocation3 + $0x4c] ss:$16 sps:$4 sm:$0xff]  }
 0x13b   :  { %v731_v43 = vadd.f32 %v727_v41, %v699_v28  ;;  %v2577_v62 = vld [vmem:[#allocation3 + $0x268] ss:$16 sps:$4 sm:$0xff]   ;;  %v2585_v5 = vld [vmem:[#allocation3 + $0x24c] ss:$16 sps:$4 sm:$0xff]  }
 0x13c   :  { %v433_v48 = vadd.f32 %v429_v22, %v401_v34  ;;  %v734_v42 = vadd.f32 %v730_v33, %v702_v35  ;;  %v3020_v57 = vpack.c.bf16 %v432_v23, %v430_v51  ;;  %v2580_v6 = vld [vmem:[#allocation3 + $0x48] ss:$16 sps:$4 sm:$0xff]   ;;  %v2588_v8 = vld [vmem:[#allocation3 + $0x2c] ss:$16 sps:$4 sm:$0xff]  }
 0x13d   :  { %v3022_v58 = vpack.c.bf16 %v733_v32, %v731_v43  ;;  %v2583_v7 = vld [vmem:[#allocation3 + $0x248] ss:$16 sps:$4 sm:$0xff]   ;;  %v2591_v9 = vld [vmem:[#allocation3 + $0x22c] ss:$16 sps:$4 sm:$0xff]  }
 0x13e   :  { %v2366_v37 = vpack.c.bf16 %v433_v48, %v431_v36  ;;  %v2368_v44 = vpack.c.bf16 %v734_v42, %v732_v45  ;;  %v2586_v10 = vld [vmem:[#allocation3 + $0x28] ss:$16 sps:$4 sm:$0xff]   ;;  %v2594_v18 = vld [vmem:[#allocation3 + $0xc] ss:$16 sps:$4 sm:$0xff]  }
 0x13f   :  { %v2589_v17 = vld [vmem:[#allocation3 + $0x228] ss:$16 sps:$4 sm:$0xff]   ;;  %v2597_v19 = vld [vmem:[#allocation3 + $0x20c] ss:$16 sps:$4 sm:$0xff]  }
 0x140   :  { %1595 = vmatprep.mubr.bf16.mxu0 %v2366_v37  ;;  %1638 = vmatprep.mubr.bf16.mxu1 %v2368_v44  ;;  %v2592_v3 = vld [vmem:[#allocation3 + $0x8] ss:$16 sps:$4 sm:$0xff]   ;;  %v2600_v20 = vld [vmem:[#allocation3 + $0x1ec] ss:$16 sps:$4 sm:$0xff]  }
 0x141   :  { %1596 = vmatmul.mubr.bf16.vlgmr.msra.gmra.mxu0 %v3020_v57  ;;  %1639 = vmatmul.mubr.bf16.vlgmr.msra.gmra.mxu1 %v3022_v58  ;;  %v2595_v4 = vld [vmem:[#allocation3 + $0x208] ss:$16 sps:$4 sm:$0xff]   ;;  %v2603_v21 = vld [vmem:[#allocation3 + $0x3ec] ss:$16 sps:$4 sm:$0xff]  }
 0x142   :  { %1650 = vmatpush1.bf16.msra.mxu0 %v2550_v56  ;;  %1693 = vmatpush1.bf16.msra.mxu1 %v2553_v46  ;;  %v2598_v38 = vld [vmem:[#allocation3 + $0x1e8] ss:$16 sps:$4 sm:$0xff]   ;;  %v2606_v39 = vld [vmem:[#allocation3 + $0x1cc] ss:$16 sps:$4 sm:$0xff]  }
 0x143   :  { %1681 = vmatprep.mubr.bf16.mxu0 %v2366_v37  ;;  %1724 = vmatprep.mubr.bf16.mxu1 %v2368_v44  ;;  %v2601_v11 = vld [vmem:[#allocation3 + $0x3e8] ss:$16 sps:$4 sm:$0xff]   ;;  %v2609_v16 = vld [vmem:[#allocation3 + $0x3cc] ss:$16 sps:$4 sm:$0xff]  }
 0x144   :  { %1651 = vmatprep.subr.bf16.mxu0 %v2558_v15  ;;  %1694 = vmatprep.subr.bf16.mxu1 %v2561_v27  ;;  %v2604_v24 = vld [vmem:[#allocation3 + $0x1c8] ss:$16 sps:$4 sm:$0xff]   ;;  %v2612_v13 = vld [vmem:[#allocation3 + $0x1ac] ss:$16 sps:$4 sm:$0xff]  }
 0x145   :  { %v2607_v12 = vld [vmem:[#allocation3 + $0x3c8] ss:$16 sps:$4 sm:$0xff]   ;;  %v2615_v25 = vld [vmem:[#allocation3 + $0x3ac] ss:$16 sps:$4 sm:$0xff]  }
 0x146   :  { %1652 = vmatpush1.bf16.msra.mxu0 %v2556_v49  ;;  %1695 = vmatpush1.bf16.msra.mxu1 %v2559_v50  ;;  %v2610_v26 = vld [vmem:[#allocation3 + $0x1a8] ss:$16 sps:$4 sm:$0xff]   ;;  %v2618_v28 = vld [vmem:[#allocation3 + $0x18c] ss:$16 sps:$4 sm:$0xff]   ;;  %v2648_v50 = vld [vmem:[#allocation6 + $0x70] sm:$0xff]  }
 0x147   :  { %1653 = vmatprep.subr.bf16.mxu0 %v2564_v47  ;;  %1696 = vmatprep.subr.bf16.mxu1 %v2567_v59  ;;  %v2613_v14 = vld [vmem:[#allocation3 + $0x3a8] ss:$16 sps:$4 sm:$0xff]   ;;  %v2621_v22 = vld [vmem:[#allocation3 + $0x38c] ss:$16 sps:$4 sm:$0xff]   ;;  %v2649_v47 = vld [vmem:[#allocation6 + $0x30] sm:$0xff]  }
 0x148   :  { %v2616_v33 = vld [vmem:[#allocation3 + $0x188] ss:$16 sps:$4 sm:$0xff]   ;;  %v2624_v35 = vld [vmem:[#allocation3 + $0x16c] ss:$16 sps:$4 sm:$0xff]  }
 0x149   :  { %v2619_v34 = vld [vmem:[#allocation3 + $0x388] ss:$16 sps:$4 sm:$0xff]   ;;  %v2627_v40 = vld [vmem:[#allocation3 + $0x36c] ss:$16 sps:$4 sm:$0xff]  }
 0x14a   :  { %1654 = vmatpush1.bf16.msra.mxu0 %v2562_v60  ;;  %1697 = vmatpush1.bf16.msra.mxu1 %v2565_v52  ;;  %v2622_v41 = vld [vmem:[#allocation3 + $0x168] ss:$16 sps:$4 sm:$0xff]   ;;  %v2630_v32 = vld [vmem:[#allocation3 + $0x14c] ss:$16 sps:$4 sm:$0xff]   ;;  %v2652_v52 = vld [vmem:[#allocation6 + $0x60] sm:$0xff]  }
 0x14b   :  { %1655 = vmatprep.subr.bf16.mxu0 %v2570_v55  ;;  %1698 = vmatprep.subr.bf16.mxu1 %v2573_v61  ;;  %v2625_v23 = vld [vmem:[#allocation3 + $0x368] ss:$16 sps:$4 sm:$0xff]   ;;  %v2633_v36 = vld [vmem:[#allocation3 + $0x34c] ss:$16 sps:$4 sm:$0xff]   ;;  %v2653_v55 = vld [vmem:[#allocation6 + $0x20] sm:$0xff]  }
 0x14c   :  { %v2628_v45 = vld [vmem:[#allocation3 + $0x148] ss:$16 sps:$4 sm:$0xff]   ;;  %v2636_v42 = vld [vmem:[#allocation3 + $0x12c] ss:$16 sps:$4 sm:$0xff]  }
 0x14d   :  { %v2631_v48 = vld [vmem:[#allocation3 + $0x348] ss:$16 sps:$4 sm:$0xff]   ;;  %v2639_v51 = vld [vmem:[#allocation3 + $0x32c] ss:$16 sps:$4 sm:$0xff]  }
 0x14e   :  { %1656 = vmatpush1.bf16.msra.mxu0 %v2568_v53  ;;  %1699 = vmatpush1.bf16.msra.mxu1 %v2571_v54  ;;  %v2634_v43 = vld [vmem:[#allocation3 + $0x128] ss:$16 sps:$4 sm:$0xff]   ;;  %v2642_v44 = vld [vmem:[#allocation3 + $0x10c] ss:$16 sps:$4 sm:$0xff]   ;;  %v2656_v54 = vld [vmem:[#allocation6 + $0x50] sm:$0xff]  }
 0x14f   :  { %1657 = vmatprep.subr.bf16.mxu0 %v2576_v0  ;;  %1700 = vmatprep.subr.bf16.mxu1 %v2579_v1  ;;  %v2637_v37 = vld [vmem:[#allocation3 + $0x328] ss:$16 sps:$4 sm:$0xff]   ;;  %v2645_v56 = vld [vmem:[#allocation3 + $0x30c] ss:$16 sps:$4 sm:$0xff]  }
 0x150   :  { %v2640_v46 = vld [vmem:[#allocation3 + $0x108] ss:$16 sps:$4 sm:$0xff]  }
 0x151   :  { %v2643_v15 = vld [vmem:[#allocation3 + $0x308] ss:$16 sps:$4 sm:$0xff]  }
 0x152   :  { %1658 = vmatpush1.bf16.msra.mxu0 %v2574_v2  ;;  %1701 = vmatpush1.bf16.msra.mxu1 %v2577_v62  ;;  %v2646_v27 = vld [vmem:[#allocation6 + $0x78] sm:$0xff]   ;;  %v2650_v59 = vld [vmem:[#allocation6 + $0x68] sm:$0xff]   ;;  %v2664_v2 = vld [vmem:[#allocation6 + $0xf0] sm:$0xff]  }
 0x153   :  { %1659 = vmatprep.subr.bf16.mxu0 %v2582_v63  ;;  %1702 = vmatprep.subr.bf16.mxu1 %v2585_v5  ;;  %v2647_v49 = vld [vmem:[#allocation6 + $0x38] sm:$0xff]   ;;  %v2651_v60 = vld [vmem:[#allocation6 + $0x28] sm:$0xff]   ;;  %v2665_v63 = vld [vmem:[#allocation6 + $0xb0] sm:$0xff]  }
 0x154   :  { %v2654_v61 = vld [vmem:[#allocation6 + $0x58] sm:$0xff]   ;;  %v2658_v0 = vld [vmem:[#allocation6 + $0x48] sm:$0xff]   ;;  %v2660_v5 = vld [vmem:[#allocation6 + $0x40] sm:$0xff]  }
 0x155   :  { %v2655_v53 = vld [vmem:[#allocation6 + $0x18] sm:$0xff]   ;;  %v2659_v62 = vld [vmem:[#allocation6 + $0x8] sm:$0xff]  }
 0x156   :  { %1660 = vmatpush1.bf16.msra.mxu0 %v2580_v6  ;;  %1703 = vmatpush1.bf16.msra.mxu1 %v2583_v7  ;;  %v2663_v1 = vld [vmem:[#allocation6 + $0xb8] sm:$0xff]   ;;  %v2666_v6 = vld [vmem:[#allocation6 + $0xe8] sm:$0xff]   ;;  %v2661_v7 = vld [vmem:[#allocation6] sm:$0xff]  }
 0x157   :  { %1661 = vmatprep.subr.bf16.mxu0 %v2588_v8  ;;  %1704 = vmatprep.subr.bf16.mxu1 %v2591_v9  ;;  %v2667_v8 = vld [vmem:[#allocation6 + $0xa8] sm:$0xff]   ;;  %v2668_v9 = vld [vmem:[#allocation6 + $0xe0] sm:$0xff]  }
 0x15a   :  { %1662 = vmatpush1.bf16.msra.mxu0 %v2586_v10  ;;  %1705 = vmatpush1.bf16.msra.mxu1 %v2589_v17  ;;  %v2669_v10 = vld [vmem:[#allocation6 + $0xa0] sm:$0xff]   ;;  %v2670_v17 = vld [vmem:[#allocation6 + $0xd8] sm:$0xff]  }
 0x15b   :  { %1663 = vmatprep.subr.bf16.mxu0 %v2594_v18  ;;  %1706 = vmatprep.subr.bf16.mxu1 %v2597_v19  ;;  %v2671_v18 = vld [vmem:[#allocation6 + $0x98] sm:$0xff]   ;;  %v2672_v19 = vld [vmem:[#allocation6 + $0xd0] sm:$0xff]  }
 0x15e   :  { %1664 = vmatpush1.bf16.msra.mxu0 %v2592_v3  ;;  %1707 = vmatpush1.bf16.msra.mxu1 %v2595_v4  ;;  %v2673_v3 = vld [vmem:[#allocation6 + $0x90] sm:$0xff]   ;;  %v2674_v4 = vld [vmem:[#allocation6 + $0xc8] sm:$0xff]  }
 0x15f   :  { %1665 = vmatprep.subr.bf16.mxu0 %v2600_v20  ;;  %1708 = vmatprep.subr.bf16.mxu1 %v2603_v21  ;;  %v2675_v20 = vld [vmem:[#allocation6 + $0x88] sm:$0xff]   ;;  %v2676_v21 = vld [vmem:[#allocation6 + $0xc0] sm:$0xff]  }
 0x162   :  { %1666 = vmatpush2.bf16.msra.mxu0 %v2598_v38  ;;  %1709 = vmatpush2.bf16.msra.mxu1 %v2601_v11  ;;  %v2677_v38 = vld [vmem:[#allocation6 + $0x80] sm:$0xff]  }
 0x163   :  { %1667 = vmatprep.subr.bf16.mxu0 %v2606_v39  ;;  %1710 = vmatprep.subr.bf16.mxu1 %v2609_v16  ;;  %v881_v11 = vld [vmem:[%s3048_s4] sm:$0xf] }
 0x164   :  { %v886_v39 = vrot.slane %v881_v11, %v2919_v30  ;;  %v890_v16 = vrot.slane %v881_v11, %v2922_v31 }
 0x166   :  { %1668 = vmatpush2.bf16.msra.mxu0 %v2604_v24  ;;  %1711 = vmatpush2.bf16.msra.mxu1 %v2607_v12 }
 0x167   :  { %1669 = vmatprep.subr.bf16.mxu0 %v2612_v13  ;;  %1712 = vmatprep.subr.bf16.mxu1 %v2615_v25 }
 0x16a   :  { %1670 = vmatpush2.bf16.msra.mxu0 %v2610_v26  ;;  %1713 = vmatpush2.bf16.msra.mxu1 %v2613_v14 }
 0x16b   :  { %1671 = vmatprep.subr.bf16.mxu0 %v2618_v28  ;;  %1714 = vmatprep.subr.bf16.mxu1 %v2621_v22 }
 0x16e   :  { %1672 = vmatpush2.bf16.msra.mxu0 %v2616_v33  ;;  %1715 = vmatpush2.bf16.msra.mxu1 %v2619_v34 }
 0x16f   :  { %1673 = vmatprep.subr.bf16.mxu0 %v2624_v35  ;;  %1716 = vmatprep.subr.bf16.mxu1 %v2627_v40 }
 0x172   :  { %1674 = vmatpush2.bf16.msra.mxu0 %v2622_v41  ;;  %1717 = vmatpush2.bf16.msra.mxu1 %v2625_v23 }
 0x173   :  { %1675 = vmatprep.subr.bf16.mxu0 %v2630_v32  ;;  %1718 = vmatprep.subr.bf16.mxu1 %v2633_v36 }
 0x176   :  { %1676 = vmatpush2.bf16.msra.mxu0 %v2628_v45  ;;  %1719 = vmatpush2.bf16.msra.mxu1 %v2631_v48 }
 0x177   :  { %1677 = vmatprep.subr.bf16.mxu0 %v2636_v42  ;;  %1720 = vmatprep.subr.bf16.mxu1 %v2639_v51 }
 0x17a   :  { %1678 = vmatpush2.bf16.msra.mxu0 %v2634_v43  ;;  %1721 = vmatpush2.bf16.msra.mxu1 %v2637_v37 }
 0x17b   :  { %1679 = vmatprep.subr.bf16.mxu0 %v2642_v44  ;;  %1722 = vmatprep.subr.bf16.mxu1 %v2645_v56 }
 0x17e   :  { %1680 = vmatpush2.bf16.msra.mxu0 %v2640_v46  ;;  %1723 = vmatpush2.bf16.msra.mxu1 %v2643_v15  ;;  %v893_v46 = vsub.s32 2, %v2916_v29  ;;  %v897_v15 = vsub.s32 3, %v2916_v29 }
 0x17f   :  { %2369 = vmatprep.subr.bf16.mxu0 %v2646_v27 }
 0x180   :  { %v894_v27 = vrot.slane %v881_v11, %v893_v46 }
 0x181   :  { %1682 = vmatmul.mubr.bf16.vlgmr.msra.gmra.mxu0 %v3020_v57  ;;  %1725 = vmatmul.mubr.bf16.vlgmr.msra.gmra.mxu1 %v3022_v58  ;;  %v2657_v57 = vld [vmem:[#allocation6 + $0x10] sm:$0xff]   ;;  %v2662_v58 = vld [vmem:[#allocation6 + $0xf8] sm:$0xff]  }
 0x182   :  { %2370 = vmatpush3.bf16.msra.mxu0 %v2647_v49  ;;  %2391 = vmatprep.subr.bf16.mxu1 %v2662_v58  ;;  %v898_v49 = vrot.slane %v881_v11, %v897_v15 }
 0x183   :  { %2371 = vmatprep.subr.bf16.mxu0 %v2648_v50  ;;  %2392 = vmatpush3.bf16.msra.mxu1 %v2663_v1 }
 0x184   :  { %2393 = vmatprep.subr.bf16.mxu1 %v2664_v2 }
 0x186   :  { %2372 = vmatpush3.bf16.msra.mxu0 %v2649_v47 }
 0x187   :  { %2373 = vmatprep.subr.bf16.mxu0 %v2650_v59  ;;  %2394 = vmatpush3.bf16.msra.mxu1 %v2665_v63 }
 0x188   :  { %2395 = vmatprep.subr.bf16.mxu1 %v2666_v6 }
 0x18a   :  { %2374 = vmatpush3.bf16.msra.mxu0 %v2651_v60 }
 0x18b   :  { %2375 = vmatprep.subr.bf16.mxu0 %v2652_v52  ;;  %2396 = vmatpush3.bf16.msra.mxu1 %v2667_v8 }
 0x18c   :  { %2397 = vmatprep.subr.bf16.mxu1 %v2668_v9 }
 0x18e   :  { %2376 = vmatpush3.bf16.msra.mxu0 %v2653_v55 }
 0x18f   :  { %2377 = vmatprep.subr.bf16.mxu0 %v2654_v61  ;;  %2398 = vmatpush3.bf16.msra.mxu1 %v2669_v10 }
 0x190   :  { %2399 = vmatprep.subr.bf16.mxu1 %v2670_v17 }
 0x192   :  { %2378 = vmatpush3.bf16.msra.mxu0 %v2655_v53 }
 0x193   :  { %2379 = vmatprep.subr.bf16.mxu0 %v2656_v54  ;;  %2400 = vmatpush3.bf16.msra.mxu1 %v2671_v18 }
 0x194   :  { %2401 = vmatprep.subr.bf16.mxu1 %v2672_v19 }
 0x196   :  { %2380 = vmatpush3.bf16.msra.mxu0 %v2657_v57 }
 0x197   :  { %2381 = vmatprep.subr.bf16.mxu0 %v2658_v0  ;;  %2402 = vmatpush3.bf16.msra.mxu1 %v2673_v3 }
 0x198   :  { %2403 = vmatprep.subr.bf16.mxu1 %v2674_v4 }
 0x19a   :  { %2382 = vmatpush3.bf16.msra.mxu0 %v2659_v62 }
 0x19b   :  { %2383 = vmatprep.subr.bf16.mxu0 %v2660_v5  ;;  %2404 = vmatpush3.bf16.msra.mxu1 %v2675_v20 }
 0x19c   :  { %2405 = vmatprep.subr.bf16.mxu1 %v2676_v21 }
 0x19e   :  { %2384 = vmatpush3.bf16.msra.mxu0 %v2661_v7 }
 0x19f   :  { %2406 = vmatpush3.bf16.msra.mxu1 %v2677_v38  ;;  %v2319_v38 = vld [vmem:[%s3050_s6] ss:$0 sm:$0xff]  ;;  %s2755_s6 = smov [#allocation8]  }
 0x1a0   :  { %s2127_s21 = sshll.u32 %s2755_s6, 4  ;;  %s2128_s21 = int_to_ptr.vmem [resolvable:$true] %s2127_s21 }
 0x1a1   :  { %s2722_s22 = scalar_lea.vmem %s2128_s21, 128  ;;  %p2727_p11 = scmp.lt.s32.totalorder %s2128_s21, %s2128_s21 }
 0x1a2   :  { %p2723_p10 = scmp.ne.s32.totalorder %s2128_s21, %s2722_s22  ;;  %p2728_p12 = scmp.lt.s32.totalorder %s2722_s22, %s2722_s22 }
 0x1a4   :  { %p2729_p13 = por %p2728_p12, %p2727_p11 }
 0x1a6   :  { %p2730_p0 = pnand %p2729_p13, %p2723_p10 }
 0x201   :  { %v1597_v24 = vpop.f32.mrf.mxu0  ;;  %v1640_v12 = vpop.f32.mrf.mxu1 }
 0x202   :  { %v1598_v13 = vadd.f32 %v1597_v24, %v886_v39 }
 0x203   :  { %v1599_v25 = vpop.f32.mrf.mxu0  ;;  %v1642_v26 = vpop.f32.mrf.mxu1 }
 0x204   :  { %v1600_v14 = vadd.f32 %v1599_v25, %v890_v16  ;;  %v1641_v35 = vadd.f32 %v1640_v12, %v1598_v13 }
 0x205   :  { %v1601_v28 = vpop.f32.mrf.mxu0  ;;  %v1644_v22 = vpop.f32.mrf.mxu1 }
 0x206   :  { %v1643_v33 = vadd.f32 %v1642_v26, %v1600_v14  ;;  %v1602_v34 = vadd.f32 %v1601_v28, %v886_v39  ;;  %v1735_v48 = vmax.f32 %v1641_v35, 0.0 }
 0x207   :  { %v1603_v40 = vpop.f32.mrf.mxu0  ;;  %v1646_v32 = vpop.f32.mrf.mxu1 }
 0x208   :  { %v1645_v41 = vadd.f32 %v1644_v22, %v1602_v34  ;;  %v1604_v23 = vadd.f32 %v1603_v40, %v890_v16  ;;  %v1736_v36 = vmax.f32 %v1643_v33, 0.0  ;;  %v1743_v37 = vmin.f32 %v1735_v48, 6.0 }
 0x20a   :  { %v1739_v45 = vmax.f32 %v1645_v41, 0.0  ;;  %v1647_v30 = vadd.f32 %v1646_v32, %v1604_v23  ;;  %v1744_v51 = vmin.f32 %v1736_v36, 6.0 }
 0x20c   :  { %v1740_v31 = vmax.f32 %v1647_v30, 0.0  ;;  %v1747_v42 = vmin.f32 %v1739_v45, 6.0 }
 0x20e   :  { %v1748_v43 = vmin.f32 %v1740_v31, 6.0  ;;  %v1751_v56 = vpack.c.bf16 %v1747_v42, %v1743_v37 }
 0x210   :  { %v1752_v44 = vpack.c.bf16 %v1748_v43, %v1744_v51 }
 0x212   :  { %2050 = vmatprep.mubr.bf16.mxu0 %v1752_v44 }
 0x213   :  { %2051 = vmatmul.mubr.bf16.vlgmr.msra.gmra.mxu0 %v1751_v56 }
 0x241   :  { %v1683_v50 = vpop.f32.mrf.mxu0  ;;  %v1726_v47 = vpop.f32.mrf.mxu1 }
 0x242   :  { %v1684_v59 = vadd.f32 %v1683_v50, %v894_v27 }
 0x243   :  { %v1685_v60 = vpop.f32.mrf.mxu0  ;;  %v1728_v52 = vpop.f32.mrf.mxu1 }
 0x244   :  { %v1686_v55 = vadd.f32 %v1685_v60, %v898_v49  ;;  %v1727_v0 = vadd.f32 %v1726_v47, %v1684_v59 }
 0x245   :  { %v1687_v61 = vpop.f32.mrf.mxu0  ;;  %v1730_v53 = vpop.f32.mrf.mxu1 }
 0x246   :  { %v1729_v54 = vadd.f32 %v1728_v52, %v1686_v55  ;;  %v1688_v57 = vadd.f32 %v1687_v61, %v894_v27  ;;  %v1737_v6 = vmax.f32 %v1727_v0, 0.0 }
 0x247   :  { %v1689_v58 = vpop.f32.mrf.mxu0  ;;  %v1732_v62 = vpop.f32.mrf.mxu1 }
 0x248   :  { %v1731_v1 = vadd.f32 %v1730_v53, %v1688_v57  ;;  %v1690_v2 = vadd.f32 %v1689_v58, %v898_v49  ;;  %v1738_v63 = vmax.f32 %v1729_v54, 0.0  ;;  %v1745_v17 = vmin.f32 %v1737_v6, 6.0 }
 0x24a   :  { %v1741_v5 = vmax.f32 %v1731_v1, 0.0  ;;  %v1733_v29 = vadd.f32 %v1732_v62, %v1690_v2  ;;  %v1746_v9 = vmin.f32 %v1738_v63, 6.0 }
 0x24c   :  { %v1742_v7 = vmax.f32 %v1733_v29, 0.0  ;;  %v1749_v8 = vmin.f32 %v1741_v5, 6.0 }
 0x24e   :  { %v1750_v10 = vmin.f32 %v1742_v7, 6.0  ;;  %v1753_v19 = vpack.c.bf16 %v1749_v8, %v1745_v17 }
 0x250   :  { %v1754_v18 = vpack.c.bf16 %v1750_v10, %v1746_v9 }
 0x252   :  { %2091 = vmatprep.mubr.bf16.mxu1 %v1754_v18 }
 0x253   :  { %2092 = vmatmul.mubr.bf16.vlgmr.msra.gmra.mxu1 %v1753_v19 }
 0x2d3   :  { %v2385_v3 = vpop.f32.mrf.mxu0 }
 0x2d5   :  { %v2386_v4 = vpop.f32.mrf.mxu0 }
 0x2d6   :  { %v2387_v21 = vadd.f32 %v2386_v4, %v2385_v3 }
 0x2d7   :  { %v2388_v20 = vpop.f32.mrf.mxu0 }
 0x2d8   :  { %v2053_v24 = vadd.f32 %v2387_v21, %v2319_v38 }
 0x2d9   :  { %v2389_v11 = vpop.f32.mrf.mxu0 }
 0x2da   :  { %v2390_v12 = vadd.f32 %v2389_v11, %v2388_v20 }
 0x2dc   :  { %v2056_v28 = vadd.f32 %v2390_v12, %v2319_v38 }
 0x313   :  { %v2407_v39 = vpop.f32.mrf.mxu1 }
 0x315   :  { %v2408_v16 = vpop.f32.mrf.mxu1 }
 0x316   :  { %v2409_v13 = vadd.f32 %v2408_v16, %v2407_v39 }
 0x317   :  { %v2410_v25 = vpop.f32.mrf.mxu1 }
 0x318   :  { %v2094_v26 = vadd.f32 %v2409_v13, %v2053_v24 }
 0x319   :  { %v2411_v14 = vpop.f32.mrf.mxu1 }
 0x31a   :  { %v2412_v22 = vadd.f32 %v2411_v14, %v2410_v25  ;;  %v2100_v33 = vmul.f32 %v2094_v26, %v2094_v26 }
 0x31c   :  { %v2097_v34 = vadd.f32 %v2412_v22, %v2056_v28  ;;  %2102 = vadd.xlane.f32.xlu0 %v2100_v33 }
 0x31e   :  { %v2101_v35 = vmul.f32 %v2097_v34, %v2097_v34 }
 0x320   :  { %2104 = vadd.xlane.f32.xlu0 %v2101_v35 }
 0x3a5   :  { %v2103_v40 = vpop.xlane.xlu0 %2102 }
 0x3a6   :  { %v2106_v41 = vmax.f32 %v2103_v40, 1e-24 }
 0x3a8   :  { %2678 = vrsqrt.f32 %v2106_v41 }
 0x3a9   :  { %v2105_v23 = vpop.xlane.xlu0 %2104 }
 0x3aa   :  { %v2107_v32 = vmax.f32 %v2105_v23, 1e-24 }
 0x3ac   :  { %2680 = vrsqrt.f32 %v2107_v32 }
 0x3b5   :  { %v2679_v36 = vpop.eup %2678 }
 0x3b6   :  { %v2110_v30 = vmul.f32 %v2679_v36, %v2094_v26 }
 0x3b9   :  { %v2681_v45 = vpop.eup %2680 }
 0x3ba   :  { %v2111_v48 = vmul.f32 %v2681_v45, %v2097_v34 }
 0x3bc   :  { %v2363_v31 = vpack.c.bf16 %v2111_v48, %v2110_v30 }
 0x3be   :  { %2364 = vst [vmem:[#allocation8] sm:$0xff] %v2363_v31  }
 0x3bf   :  { %2733 = shalt.err (!%p2730_p0)
}
 0x3c0   :  { %2133 = dma.vmem_to_hbm [thread:$0]  %s2128_s21, 128, %s3051_s7, [#allocation5], %s2752_s11, %s2752_s11, %s2753_s12  }
 0x3c1   :  { %2746 = dma.done.wait [#allocation5], 128  }
 0x3c2   :  { %2747 = vsyncadd [#allocation5], 4294967168 }
 0x3c3   :  { %2137 = vsyncpa [#allocation4], 1 }
 0x3c4   :  { %2138 = vsyncpa [#allocation7], 1 }
 0x3c5   :  { %2139 = vsyncpa [#allocation5], 1 }

</bundles_post_ra>
